<compile_context>
chip_gen: v5e
topology: v5e:2x2
jax: 0.10.0
libtpu: 0.0.40
codegen_flags: <defaults>
</compile_context>

<pallas_src>
import jax
import jax.numpy as jnp
from jax import lax
from jax.experimental import pallas as pl
from jax.experimental.pallas import tpu as pltpu

# ---------------- small synthetic GPT-2 config ----------------
VOCAB = 64
HIDDEN = 32
N_HEAD = 4
HEAD_DIM = HIDDEN // N_HEAD
N_LAYER = 2
SEQ = 8
BATCH = 2
NUM_LABELS = 2
LN_EPS = 1e-5


# ---------------- fused forward kernel ----------------
def _gpt2_fused_kernel(
    x_ref,                                   # (1, S, D)   embedded tokens for this batch row
    ln1_g_ref, ln1_b_ref,                    # (L, 1, D)
    attn_w_ref, attn_b_ref,                  # (L, D, 3D), (L, 1, 3D)
    proj_w_ref, proj_b_ref,                  # (L, D, D),  (L, 1, D)
    ln2_g_ref, ln2_b_ref,                    # (L, 1, D)
    fc_w_ref, fc_b_ref,                      # (L, D, 4D), (L, 1, 4D)
    mproj_w_ref, mproj_b_ref,                # (L, 4D, D), (L, 1, D)
    lnf_g_ref, lnf_b_ref,                    # (1, D)
    score_w_ref,                             # (D, NUM_LABELS)
    o_ref,                                   # (1, 1, NUM_LABELS)
):
    x = x_ref[0]                             # (S, D) f32
    S = x.shape[0]

    def ln(v, g, b):
        mu = jnp.mean(v, axis=-1, keepdims=True)
        d = v - mu
        var = jnp.mean(d * d, axis=-1, keepdims=True)
        return d * lax.rsqrt(var + LN_EPS) * g + b

    scale = jnp.float32(1.0 / (HEAD_DIM ** 0.5))
    row = lax.broadcasted_iota(jnp.int32, (S, S), 0)
    col = lax.broadcasted_iota(jnp.int32, (S, S), 1)
    causal = col <= row
    neg = jnp.float32(jnp.finfo(jnp.float32).min / 2)   # dtype-aware mask sentinel

    for l in range(N_LAYER):
        # ---- attention block ----
        xn = ln(x, ln1_g_ref[l], ln1_b_ref[l])
        qkv = (
            jnp.dot(xn, attn_w_ref[l], preferred_element_type=jnp.float32)
            + attn_b_ref[l]
        )                                                   # (S, 3D)
        proj_w = proj_w_ref[l]                              # (D, D)
        attn_out = jnp.zeros((S, HIDDEN), jnp.float32)
        for h in range(N_HEAD):
            lo = h * HEAD_DIM
            hi = lo + HEAD_DIM
            q = qkv[:, lo:hi]
            k = qkv[:, HIDDEN + lo:HIDDEN + hi]
            v = qkv[:, 2 * HIDDEN + lo:2 * HIDDEN + hi]
            s = jnp.dot(q, k.T, preferred_element_type=jnp.float32) * scale
            s = jnp.where(causal, s, neg)
            m = jnp.max(s, axis=-1, keepdims=True)
            p = jnp.exp(s - m)
            p = p * pl.reciprocal(jnp.sum(p, axis=-1, keepdims=True), approx=True)
            o_h = jnp.dot(p, v, preferred_element_type=jnp.float32)   # (S, Dh)
            # head-merge + output projection fused: accumulate o_h @ W_proj[h]
            attn_out = attn_out + jnp.dot(
                o_h, proj_w[lo:hi, :], preferred_element_type=jnp.float32
            )
        x = x + attn_out + proj_b_ref[l]

        # ---- MLP block ----
        xn = ln(x, ln2_g_ref[l], ln2_b_ref[l])
        mid = (
            jnp.dot(xn, fc_w_ref[l], preferred_element_type=jnp.float32)
            + fc_b_ref[l]
        )
        mid = jax.nn.gelu(mid, approximate=True)            # gelu_new (tanh)
        x = (
            x
            + jnp.dot(mid, mproj_w_ref[l], preferred_element_type=jnp.float32)
            + mproj_b_ref[l]
        )

    # ---- final LN, last-token pooling, score head, log_softmax ----
    x = ln(x, lnf_g_ref[...], lnf_b_ref[...])
    # TODO(synk): with a pad_token_id, pool at the last non-pad position instead.
    pooled = x[S - 1:S, :]                                  # (1, D)
    logits = jnp.dot(pooled, score_w_ref[...], preferred_element_type=jnp.float32)
    m = jnp.max(logits, axis=-1, keepdims=True)
    z = logits - m
    lse = jnp.log(jnp.sum(jnp.exp(z), axis=-1, keepdims=True))
    o_ref[0] = z - lse                                      # (1, NUM_LABELS)


# ---------------- parameter init (deterministic, synthetic, pre-stacked) ----------------
def init_params(key):
    def nrm(k, shape, scale=0.02):
        return scale * jax.random.normal(k, shape, dtype=jnp.float32)

    ks = jax.random.split(key, 8)
    L, D = N_LAYER, HIDDEN
    return {
        "wte": nrm(ks[0], (VOCAB, D)),
        "wpe": nrm(ks[1], (SEQ, D), scale=0.01),
        "ln1_g": jnp.ones((L, 1, D), jnp.float32),
        "ln1_b": jnp.zeros((L, 1, D), jnp.float32),
        "attn_w": nrm(ks[2], (L, D, 3 * D)),
        "attn_b": jnp.zeros((L, 1, 3 * D), jnp.float32),
        "proj_w": nrm(ks[3], (L, D, D)),
        "proj_b": jnp.zeros((L, 1, D), jnp.float32),
        "ln2_g": jnp.ones((L, 1, D), jnp.float32),
        "ln2_b": jnp.zeros((L, 1, D), jnp.float32),
        "fc_w": nrm(ks[4], (L, D, 4 * D)),
        "fc_b": jnp.zeros((L, 1, 4 * D), jnp.float32),
        "mproj_w": nrm(ks[5], (L, 4 * D, D)),
        "mproj_b": jnp.zeros((L, 1, D), jnp.float32),
        "lnf_g": jnp.ones((1, D), jnp.float32),
        "lnf_b": jnp.zeros((1, D), jnp.float32),
        "score_w": nrm(ks[6], (D, NUM_LABELS)),   # GPT-2 score head has no bias
    }


# ---------------- forward pass ----------------
def gpt2_forward(params, batch_ids):
    # batch_ids: (B, 1, S) int32  -> squeeze(1) like the PyTorch module
    ids = batch_ids[:, 0, :]                                # (B, S)
    B, S = ids.shape
    L, D = N_LAYER, HIDDEN

    # embeddings (plain-JAX glue: gather)
    x_emb = (
        jnp.take(params["wte"], ids, axis=0) + params["wpe"][:S][None, :, :]
    ).astype(jnp.float32)                                   # (B, S, D)

    full3 = lambda shp: pl.BlockSpec(shp, lambda b: (0, 0, 0))
    full2 = lambda shp: pl.BlockSpec(shp, lambda b: (0, 0))

    out = pl.pallas_call(
        _gpt2_fused_kernel,
        out_shape=jax.ShapeDtypeStruct((B, 1, NUM_LABELS), jnp.float32),
        grid=(B,),
        in_specs=[
            pl.BlockSpec((1, S, D), lambda b: (b, 0, 0)),   # x (per-batch block)
            full3((L, 1, D)), full3((L, 1, D)),             # ln1 g/b
            full3((L, D, 3 * D)), full3((L, 1, 3 * D)),     # qkv w/b
            full3((L, D, D)), full3((L, 1, D)),             # attn proj w/b
            full3((L, 1, D)), full3((L, 1, D)),             # ln2 g/b
            full3((L, D, 4 * D)), full3((L, 1, 4 * D)),     # mlp fc w/b
            full3((L, 4 * D, D)), full3((L, 1, D)),         # mlp proj w/b
            full2((1, D)), full2((1, D)),                   # ln_f g/b
            full2((D, NUM_LABELS)),                         # score w
        ],
        out_specs=pl.BlockSpec((1, 1, NUM_LABELS), lambda b: (b, 0, 0)),
        compiler_params=pltpu.CompilerParams(
            dimension_semantics=("parallel",),              # v7x: shard batch over 2 TCs
        ),
    )(
        x_emb,
        params["ln1_g"], params["ln1_b"],
        params["attn_w"], params["attn_b"],
        params["proj_w"], params["proj_b"],
        params["ln2_g"], params["ln2_b"],
        params["fc_w"], params["fc_b"],
        params["mproj_w"], params["mproj_b"],
        params["lnf_g"], params["lnf_b"],
        params["score_w"],
    )
    return out[:, 0, :]                                     # (B, NUM_LABELS)


if __name__ == "__main__":
    key = jax.random.PRNGKey(0)
    pkey, ikey = jax.random.split(key)
    params = init_params(pkey)

    # input token ids: (B, 1, S), mirrors the PyTorch module's `batch` before squeeze(1)
    batch_ids = jax.random.randint(ikey, (BATCH, 1, SEQ), 0, VOCAB, dtype=jnp.int32)

    fwd = jax.jit(gpt2_forward)
    out = fwd(params, batch_ids)
    out = jax.block_until_ready(out)

    assert out.shape == (BATCH, NUM_LABELS)
    # log_softmax rows must (log-)sum to 1
    assert bool(jnp.allclose(jnp.sum(jnp.exp(out), axis=1), 1.0, atol=1e-5))
    print("KERNEL_OK")
</pallas_src>

<mosaic_0001>
module attributes {stable_mosaic.version = 11 : i64} {
  func.func @_gpt2_fused_kernel(%arg0: i32, %arg1: memref<1x8x32xf32, #tpu.memory_space<vmem>>, %arg2: memref<2x1x32xf32, #tpu.memory_space<vmem>>, %arg3: memref<2x1x32xf32, #tpu.memory_space<vmem>>, %arg4: memref<2x32x96xf32, #tpu.memory_space<vmem>>, %arg5: memref<2x1x96xf32, #tpu.memory_space<vmem>>, %arg6: memref<2x32x32xf32, #tpu.memory_space<vmem>>, %arg7: memref<2x1x32xf32, #tpu.memory_space<vmem>>, %arg8: memref<2x1x32xf32, #tpu.memory_space<vmem>>, %arg9: memref<2x1x32xf32, #tpu.memory_space<vmem>>, %arg10: memref<2x32x128xf32, #tpu.memory_space<vmem>>, %arg11: memref<2x1x128xf32, #tpu.memory_space<vmem>>, %arg12: memref<2x128x32xf32, #tpu.memory_space<vmem>>, %arg13: memref<2x1x32xf32, #tpu.memory_space<vmem>>, %arg14: memref<1x32xf32, #tpu.memory_space<vmem>>, %arg15: memref<1x32xf32, #tpu.memory_space<vmem>>, %arg16: memref<32x2xf32, #tpu.memory_space<vmem>>, %arg17: memref<1x1x2xf32, #tpu.memory_space<vmem>>) attributes {dimension_semantics = [#tpu.dimension_semantics<parallel>], iteration_bounds = array<i64: 2>, scalar_prefetch = 0 : i64, scratch_operands = 0 : i64, tpu.core_type = #tpu.core_type<tc>, window_params = [{transform_indices = @transform_0, window_bounds = array<i64: 1, 8, 32>}, {pipeline_mode = #tpu.pipeline_mode<synchronous>, transform_indices = @transform_1, window_bounds = array<i64: 2, 1, 32>}, {pipeline_mode = #tpu.pipeline_mode<synchronous>, transform_indices = @transform_2, window_bounds = array<i64: 2, 1, 32>}, {pipeline_mode = #tpu.pipeline_mode<synchronous>, transform_indices = @transform_3, window_bounds = array<i64: 2, 32, 96>}, {pipeline_mode = #tpu.pipeline_mode<synchronous>, transform_indices = @transform_4, window_bounds = array<i64: 2, 1, 96>}, {pipeline_mode = #tpu.pipeline_mode<synchronous>, transform_indices = @transform_5, window_bounds = array<i64: 2, 32, 32>}, {pipeline_mode = #tpu.pipeline_mode<synchronous>, transform_indices = @transform_6, window_bounds = array<i64: 2, 1, 32>}, {pipeline_mode = #tpu.pipeline_mode<synchronous>, transform_indices = @transform_7, window_bounds = array<i64: 2, 1, 32>}, {pipeline_mode = #tpu.pipeline_mode<synchronous>, transform_indices = @transform_8, window_bounds = array<i64: 2, 1, 32>}, {pipeline_mode = #tpu.pipeline_mode<synchronous>, transform_indices = @transform_9, window_bounds = array<i64: 2, 32, 128>}, {pipeline_mode = #tpu.pipeline_mode<synchronous>, transform_indices = @transform_10, window_bounds = array<i64: 2, 1, 128>}, {pipeline_mode = #tpu.pipeline_mode<synchronous>, transform_indices = @transform_11, window_bounds = array<i64: 2, 128, 32>}, {pipeline_mode = #tpu.pipeline_mode<synchronous>, transform_indices = @transform_12, window_bounds = array<i64: 2, 1, 32>}, {pipeline_mode = #tpu.pipeline_mode<synchronous>, transform_indices = @transform_13, window_bounds = array<i64: 1, 32>}, {pipeline_mode = #tpu.pipeline_mode<synchronous>, transform_indices = @transform_14, window_bounds = array<i64: 1, 32>}, {pipeline_mode = #tpu.pipeline_mode<synchronous>, transform_indices = @transform_15, window_bounds = array<i64: 32, 2>}, {transform_indices = @transform_16, window_bounds = array<i64: 1, 1, 2>}]} {
    %c0 = arith.constant 0 : index
    %c0_0 = arith.constant 0 : index
    %c0_1 = arith.constant 0 : index
    %0 = vector.load %arg1[%c0, %c0_0, %c0_1] : memref<1x8x32xf32, #tpu.memory_space<vmem>>, vector<1x8x32xf32>
    %1 = vector.shape_cast %0 : vector<1x8x32xf32> to vector<8x32xf32>
    %2 = tpu.iota {dimensions = array<i32: 0>} : vector<8x8xi32>
    %3 = tpu.iota {dimensions = array<i32: 1>} : vector<8x8xi32>
    %4 = arith.cmpi sle, %3, %2 : vector<8x8xi32>
    %c0_2 = arith.constant 0 : index
    %c0_3 = arith.constant 0 : index
    %c0_4 = arith.constant 0 : index
    %5 = vector.load %arg2[%c0_2, %c0_3, %c0_4] : memref<2x1x32xf32, #tpu.memory_space<vmem>>, vector<1x1x32xf32>
    %6 = vector.shape_cast %5 : vector<1x1x32xf32> to vector<1x32xf32>
    %c0_5 = arith.constant 0 : index
    %c0_6 = arith.constant 0 : index
    %c0_7 = arith.constant 0 : index
    %7 = vector.load %arg3[%c0_5, %c0_6, %c0_7] : memref<2x1x32xf32, #tpu.memory_space<vmem>>, vector<1x1x32xf32>
    %8 = vector.shape_cast %7 : vector<1x1x32xf32> to vector<1x32xf32>
    %cst = arith.constant dense<0.000000e+00> : vector<8xf32>
    %9 = vector.multi_reduction <add>, %1, %cst [1] : vector<8x32xf32> to vector<8xf32>
    %10 = vector.shape_cast %9 : vector<8xf32> to vector<8x1xf32>
    %cst_8 = arith.constant 3.200000e+01 : f32
    %11 = vector.broadcast %cst_8 : f32 to vector<8x1xf32>
    %12 = arith.divf %10, %11 : vector<8x1xf32>
    %13 = vector.broadcast %12 : vector<8x1xf32> to vector<8x32xf32>
    %14 = arith.subf %1, %13 : vector<8x32xf32>
    %15 = arith.mulf %14, %14 : vector<8x32xf32>
    %cst_9 = arith.constant dense<0.000000e+00> : vector<8xf32>
    %16 = vector.multi_reduction <add>, %15, %cst_9 [1] : vector<8x32xf32> to vector<8xf32>
    %17 = vector.shape_cast %16 : vector<8xf32> to vector<8x1xf32>
    %cst_10 = arith.constant 3.200000e+01 : f32
    %18 = vector.broadcast %cst_10 : f32 to vector<8x1xf32>
    %19 = arith.divf %17, %18 : vector<8x1xf32>
    %cst_11 = arith.constant 9.99999974E-6 : f32
    %20 = vector.broadcast %cst_11 : f32 to vector<8x1xf32>
    %21 = arith.addf %19, %20 : vector<8x1xf32>
    %22 = math.rsqrt %21 : vector<8x1xf32>
    %23 = vector.broadcast %22 : vector<8x1xf32> to vector<8x32xf32>
    %24 = arith.mulf %14, %23 : vector<8x32xf32>
    %25 = vector.broadcast %6 : vector<1x32xf32> to vector<8x32xf32>
    %26 = arith.mulf %24, %25 : vector<8x32xf32>
    %27 = vector.broadcast %8 : vector<1x32xf32> to vector<8x32xf32>
    %28 = arith.addf %26, %27 : vector<8x32xf32>
    %c0_12 = arith.constant 0 : index
    %c0_13 = arith.constant 0 : index
    %c0_14 = arith.constant 0 : index
    %29 = vector.load %arg4[%c0_12, %c0_13, %c0_14] : memref<2x32x96xf32, #tpu.memory_space<vmem>>, vector<1x32x96xf32>
    %30 = vector.shape_cast %29 : vector<1x32x96xf32> to vector<32x96xf32>
    %cst_15 = arith.constant dense<0.000000e+00> : vector<8x96xf32>
    %31 = tpu.matmul %28, %30, %cst_15 {dimension_numbers = #tpu.dot_dimension_numbers<[1], [0], [0], [1], [0, 0, 1, 1], [], []>} : vector<8x32xf32>, vector<32x96xf32>, vector<8x96xf32> -> vector<8x96xf32>
    %c0_16 = arith.constant 0 : index
    %c0_17 = arith.constant 0 : index
    %c0_18 = arith.constant 0 : index
    %32 = vector.load %arg5[%c0_16, %c0_17, %c0_18] : memref<2x1x96xf32, #tpu.memory_space<vmem>>, vector<1x1x96xf32>
    %33 = vector.shape_cast %32 : vector<1x1x96xf32> to vector<1x96xf32>
    %34 = vector.broadcast %33 : vector<1x96xf32> to vector<8x96xf32>
    %35 = arith.addf %31, %34 : vector<8x96xf32>
    %c0_19 = arith.constant 0 : index
    %c0_20 = arith.constant 0 : index
    %c0_21 = arith.constant 0 : index
    %36 = vector.load %arg6[%c0_19, %c0_20, %c0_21] : memref<2x32x32xf32, #tpu.memory_space<vmem>>, vector<1x32x32xf32>
    %37 = vector.shape_cast %36 : vector<1x32x32xf32> to vector<32x32xf32>
    %cst_22 = arith.constant 0.000000e+00 : f32
    %38 = vector.broadcast %cst_22 : f32 to vector<8x32xf32>
    %39 = vector.extract_strided_slice %35 {offsets = [0, 0], sizes = [8, 8], strides = [1, 1]} : vector<8x96xf32> to vector<8x8xf32>
    %40 = vector.extract_strided_slice %35 {offsets = [0, 32], sizes = [8, 8], strides = [1, 1]} : vector<8x96xf32> to vector<8x8xf32>
    %41 = vector.extract_strided_slice %35 {offsets = [0, 64], sizes = [8, 8], strides = [1, 1]} : vector<8x96xf32> to vector<8x8xf32>
    %42 = tpu.transpose %40, [1, 0] : vector<8x8xf32> -> vector<8x8xf32>
    %cst_23 = arith.constant dense<0.000000e+00> : vector<8x8xf32>
    %43 = tpu.matmul %39, %42, %cst_23 {dimension_numbers = #tpu.dot_dimension_numbers<[1], [0], [0], [1], [0, 0, 1, 1], [], []>} : vector<8x8xf32>, vector<8x8xf32>, vector<8x8xf32> -> vector<8x8xf32>
    %cst_24 = arith.constant 0.353553385 : f32
    %44 = vector.broadcast %cst_24 : f32 to vector<8x8xf32>
    %45 = arith.mulf %43, %44 : vector<8x8xf32>
    %cst_25 = arith.constant -1.70141173E+38 : f32
    %46 = vector.broadcast %cst_25 : f32 to vector<8x8xf32>
    %47 = arith.select %4, %45, %46 : vector<8x8xi1>, vector<8x8xf32>
    %cst_26 = arith.constant dense<0xFF800000> : vector<8xf32>
    %48 = vector.multi_reduction <maximumf>, %47, %cst_26 [1] : vector<8x8xf32> to vector<8xf32>
    %49 = vector.shape_cast %48 : vector<8xf32> to vector<8x1xf32>
    %50 = vector.broadcast %49 : vector<8x1xf32> to vector<8x8xf32>
    %51 = arith.subf %47, %50 : vector<8x8xf32>
    %52 = math.exp %51 : vector<8x8xf32>
    %cst_27 = arith.constant dense<0.000000e+00> : vector<8xf32>
    %53 = vector.multi_reduction <add>, %52, %cst_27 [1] : vector<8x8xf32> to vector<8xf32>
    %54 = vector.shape_cast %53 : vector<8xf32> to vector<8x1xf32>
    %55 = tpu.reciprocal %54 {approx = true} : vector<8x1xf32> -> vector<8x1xf32>
    %56 = vector.broadcast %55 : vector<8x1xf32> to vector<8x8xf32>
    %57 = arith.mulf %52, %56 : vector<8x8xf32>
    %cst_28 = arith.constant dense<0.000000e+00> : vector<8x8xf32>
    %58 = tpu.matmul %57, %41, %cst_28 {dimension_numbers = #tpu.dot_dimension_numbers<[1], [0], [0], [1], [0, 0, 1, 1], [], []>} : vector<8x8xf32>, vector<8x8xf32>, vector<8x8xf32> -> vector<8x8xf32>
    %59 = vector.extract_strided_slice %37 {offsets = [0, 0], sizes = [8, 32], strides = [1, 1]} : vector<32x32xf32> to vector<8x32xf32>
    %cst_29 = arith.constant dense<0.000000e+00> : vector<8x32xf32>
    %60 = tpu.matmul %58, %59, %cst_29 {dimension_numbers = #tpu.dot_dimension_numbers<[1], [0], [0], [1], [0, 0, 1, 1], [], []>} : vector<8x8xf32>, vector<8x32xf32>, vector<8x32xf32> -> vector<8x32xf32>
    %61 = arith.addf %38, %60 : vector<8x32xf32>
    %62 = vector.extract_strided_slice %35 {offsets = [0, 8], sizes = [8, 8], strides = [1, 1]} : vector<8x96xf32> to vector<8x8xf32>
    %63 = vector.extract_strided_slice %35 {offsets = [0, 40], sizes = [8, 8], strides = [1, 1]} : vector<8x96xf32> to vector<8x8xf32>
    %64 = vector.extract_strided_slice %35 {offsets = [0, 72], sizes = [8, 8], strides = [1, 1]} : vector<8x96xf32> to vector<8x8xf32>
    %65 = tpu.transpose %63, [1, 0] : vector<8x8xf32> -> vector<8x8xf32>
    %cst_30 = arith.constant dense<0.000000e+00> : vector<8x8xf32>
    %66 = tpu.matmul %62, %65, %cst_30 {dimension_numbers = #tpu.dot_dimension_numbers<[1], [0], [0], [1], [0, 0, 1, 1], [], []>} : vector<8x8xf32>, vector<8x8xf32>, vector<8x8xf32> -> vector<8x8xf32>
    %cst_31 = arith.constant 0.353553385 : f32
    %67 = vector.broadcast %cst_31 : f32 to vector<8x8xf32>
    %68 = arith.mulf %66, %67 : vector<8x8xf32>
    %cst_32 = arith.constant -1.70141173E+38 : f32
    %69 = vector.broadcast %cst_32 : f32 to vector<8x8xf32>
    %70 = arith.select %4, %68, %69 : vector<8x8xi1>, vector<8x8xf32>
    %cst_33 = arith.constant dense<0xFF800000> : vector<8xf32>
    %71 = vector.multi_reduction <maximumf>, %70, %cst_33 [1] : vector<8x8xf32> to vector<8xf32>
    %72 = vector.shape_cast %71 : vector<8xf32> to vector<8x1xf32>
    %73 = vector.broadcast %72 : vector<8x1xf32> to vector<8x8xf32>
    %74 = arith.subf %70, %73 : vector<8x8xf32>
    %75 = math.exp %74 : vector<8x8xf32>
    %cst_34 = arith.constant dense<0.000000e+00> : vector<8xf32>
    %76 = vector.multi_reduction <add>, %75, %cst_34 [1] : vector<8x8xf32> to vector<8xf32>
    %77 = vector.shape_cast %76 : vector<8xf32> to vector<8x1xf32>
    %78 = tpu.reciprocal %77 {approx = true} : vector<8x1xf32> -> vector<8x1xf32>
    %79 = vector.broadcast %78 : vector<8x1xf32> to vector<8x8xf32>
    %80 = arith.mulf %75, %79 : vector<8x8xf32>
    %cst_35 = arith.constant dense<0.000000e+00> : vector<8x8xf32>
    %81 = tpu.matmul %80, %64, %cst_35 {dimension_numbers = #tpu.dot_dimension_numbers<[1], [0], [0], [1], [0, 0, 1, 1], [], []>} : vector<8x8xf32>, vector<8x8xf32>, vector<8x8xf32> -> vector<8x8xf32>
    %82 = vector.extract_strided_slice %37 {offsets = [8, 0], sizes = [8, 32], strides = [1, 1]} : vector<32x32xf32> to vector<8x32xf32>
    %cst_36 = arith.constant dense<0.000000e+00> : vector<8x32xf32>
    %83 = tpu.matmul %81, %82, %cst_36 {dimension_numbers = #tpu.dot_dimension_numbers<[1], [0], [0], [1], [0, 0, 1, 1], [], []>} : vector<8x8xf32>, vector<8x32xf32>, vector<8x32xf32> -> vector<8x32xf32>
    %84 = arith.addf %61, %83 : vector<8x32xf32>
    %85 = vector.extract_strided_slice %35 {offsets = [0, 16], sizes = [8, 8], strides = [1, 1]} : vector<8x96xf32> to vector<8x8xf32>
    %86 = vector.extract_strided_slice %35 {offsets = [0, 48], sizes = [8, 8], strides = [1, 1]} : vector<8x96xf32> to vector<8x8xf32>
    %87 = vector.extract_strided_slice %35 {offsets = [0, 80], sizes = [8, 8], strides = [1, 1]} : vector<8x96xf32> to vector<8x8xf32>
    %88 = tpu.transpose %86, [1, 0] : vector<8x8xf32> -> vector<8x8xf32>
    %cst_37 = arith.constant dense<0.000000e+00> : vector<8x8xf32>
    %89 = tpu.matmul %85, %88, %cst_37 {dimension_numbers = #tpu.dot_dimension_numbers<[1], [0], [0], [1], [0, 0, 1, 1], [], []>} : vector<8x8xf32>, vector<8x8xf32>, vector<8x8xf32> -> vector<8x8xf32>
    %cst_38 = arith.constant 0.353553385 : f32
    %90 = vector.broadcast %cst_38 : f32 to vector<8x8xf32>
    %91 = arith.mulf %89, %90 : vector<8x8xf32>
    %cst_39 = arith.constant -1.70141173E+38 : f32
    %92 = vector.broadcast %cst_39 : f32 to vector<8x8xf32>
    %93 = arith.select %4, %91, %92 : vector<8x8xi1>, vector<8x8xf32>
    %cst_40 = arith.constant dense<0xFF800000> : vector<8xf32>
    %94 = vector.multi_reduction <maximumf>, %93, %cst_40 [1] : vector<8x8xf32> to vector<8xf32>
    %95 = vector.shape_cast %94 : vector<8xf32> to vector<8x1xf32>
    %96 = vector.broadcast %95 : vector<8x1xf32> to vector<8x8xf32>
    %97 = arith.subf %93, %96 : vector<8x8xf32>
    %98 = math.exp %97 : vector<8x8xf32>
    %cst_41 = arith.constant dense<0.000000e+00> : vector<8xf32>
    %99 = vector.multi_reduction <add>, %98, %cst_41 [1] : vector<8x8xf32> to vector<8xf32>
    %100 = vector.shape_cast %99 : vector<8xf32> to vector<8x1xf32>
    %101 = tpu.reciprocal %100 {approx = true} : vector<8x1xf32> -> vector<8x1xf32>
    %102 = vector.broadcast %101 : vector<8x1xf32> to vector<8x8xf32>
    %103 = arith.mulf %98, %102 : vector<8x8xf32>
    %cst_42 = arith.constant dense<0.000000e+00> : vector<8x8xf32>
    %104 = tpu.matmul %103, %87, %cst_42 {dimension_numbers = #tpu.dot_dimension_numbers<[1], [0], [0], [1], [0, 0, 1, 1], [], []>} : vector<8x8xf32>, vector<8x8xf32>, vector<8x8xf32> -> vector<8x8xf32>
    %105 = vector.extract_strided_slice %37 {offsets = [16, 0], sizes = [8, 32], strides = [1, 1]} : vector<32x32xf32> to vector<8x32xf32>
    %cst_43 = arith.constant dense<0.000000e+00> : vector<8x32xf32>
    %106 = tpu.matmul %104, %105, %cst_43 {dimension_numbers = #tpu.dot_dimension_numbers<[1], [0], [0], [1], [0, 0, 1, 1], [], []>} : vector<8x8xf32>, vector<8x32xf32>, vector<8x32xf32> -> vector<8x32xf32>
    %107 = arith.addf %84, %106 : vector<8x32xf32>
    %108 = vector.extract_strided_slice %35 {offsets = [0, 24], sizes = [8, 8], strides = [1, 1]} : vector<8x96xf32> to vector<8x8xf32>
    %109 = vector.extract_strided_slice %35 {offsets = [0, 56], sizes = [8, 8], strides = [1, 1]} : vector<8x96xf32> to vector<8x8xf32>
    %110 = vector.extract_strided_slice %35 {offsets = [0, 88], sizes = [8, 8], strides = [1, 1]} : vector<8x96xf32> to vector<8x8xf32>
    %111 = tpu.transpose %109, [1, 0] : vector<8x8xf32> -> vector<8x8xf32>
    %cst_44 = arith.constant dense<0.000000e+00> : vector<8x8xf32>
    %112 = tpu.matmul %108, %111, %cst_44 {dimension_numbers = #tpu.dot_dimension_numbers<[1], [0], [0], [1], [0, 0, 1, 1], [], []>} : vector<8x8xf32>, vector<8x8xf32>, vector<8x8xf32> -> vector<8x8xf32>
    %cst_45 = arith.constant 0.353553385 : f32
    %113 = vector.broadcast %cst_45 : f32 to vector<8x8xf32>
    %114 = arith.mulf %112, %113 : vector<8x8xf32>
    %cst_46 = arith.constant -1.70141173E+38 : f32
    %115 = vector.broadcast %cst_46 : f32 to vector<8x8xf32>
    %116 = arith.select %4, %114, %115 : vector<8x8xi1>, vector<8x8xf32>
    %cst_47 = arith.constant dense<0xFF800000> : vector<8xf32>
    %117 = vector.multi_reduction <maximumf>, %116, %cst_47 [1] : vector<8x8xf32> to vector<8xf32>
    %118 = vector.shape_cast %117 : vector<8xf32> to vector<8x1xf32>
    %119 = vector.broadcast %118 : vector<8x1xf32> to vector<8x8xf32>
    %120 = arith.subf %116, %119 : vector<8x8xf32>
    %121 = math.exp %120 : vector<8x8xf32>
    %cst_48 = arith.constant dense<0.000000e+00> : vector<8xf32>
    %122 = vector.multi_reduction <add>, %121, %cst_48 [1] : vector<8x8xf32> to vector<8xf32>
    %123 = vector.shape_cast %122 : vector<8xf32> to vector<8x1xf32>
    %124 = tpu.reciprocal %123 {approx = true} : vector<8x1xf32> -> vector<8x1xf32>
    %125 = vector.broadcast %124 : vector<8x1xf32> to vector<8x8xf32>
    %126 = arith.mulf %121, %125 : vector<8x8xf32>
    %cst_49 = arith.constant dense<0.000000e+00> : vector<8x8xf32>
    %127 = tpu.matmul %126, %110, %cst_49 {dimension_numbers = #tpu.dot_dimension_numbers<[1], [0], [0], [1], [0, 0, 1, 1], [], []>} : vector<8x8xf32>, vector<8x8xf32>, vector<8x8xf32> -> vector<8x8xf32>
    %128 = vector.extract_strided_slice %37 {offsets = [24, 0], sizes = [8, 32], strides = [1, 1]} : vector<32x32xf32> to vector<8x32xf32>
    %cst_50 = arith.constant dense<0.000000e+00> : vector<8x32xf32>
    %129 = tpu.matmul %127, %128, %cst_50 {dimension_numbers = #tpu.dot_dimension_numbers<[1], [0], [0], [1], [0, 0, 1, 1], [], []>} : vector<8x8xf32>, vector<8x32xf32>, vector<8x32xf32> -> vector<8x32xf32>
    %130 = arith.addf %107, %129 : vector<8x32xf32>
    %131 = arith.addf %1, %130 : vector<8x32xf32>
    %c0_51 = arith.constant 0 : index
    %c0_52 = arith.constant 0 : index
    %c0_53 = arith.constant 0 : index
    %132 = vector.load %arg7[%c0_51, %c0_52, %c0_53] : memref<2x1x32xf32, #tpu.memory_space<vmem>>, vector<1x1x32xf32>
    %133 = vector.shape_cast %132 : vector<1x1x32xf32> to vector<1x32xf32>
    %134 = vector.broadcast %133 : vector<1x32xf32> to vector<8x32xf32>
    %135 = arith.addf %131, %134 : vector<8x32xf32>
    %c0_54 = arith.constant 0 : index
    %c0_55 = arith.constant 0 : index
    %c0_56 = arith.constant 0 : index
    %136 = vector.load %arg8[%c0_54, %c0_55, %c0_56] : memref<2x1x32xf32, #tpu.memory_space<vmem>>, vector<1x1x32xf32>
    %137 = vector.shape_cast %136 : vector<1x1x32xf32> to vector<1x32xf32>
    %c0_57 = arith.constant 0 : index
    %c0_58 = arith.constant 0 : index
    %c0_59 = arith.constant 0 : index
    %138 = vector.load %arg9[%c0_57, %c0_58, %c0_59] : memref<2x1x32xf32, #tpu.memory_space<vmem>>, vector<1x1x32xf32>
    %139 = vector.shape_cast %138 : vector<1x1x32xf32> to vector<1x32xf32>
    %cst_60 = arith.constant dense<0.000000e+00> : vector<8xf32>
    %140 = vector.multi_reduction <add>, %135, %cst_60 [1] : vector<8x32xf32> to vector<8xf32>
    %141 = vector.shape_cast %140 : vector<8xf32> to vector<8x1xf32>
    %cst_61 = arith.constant 3.200000e+01 : f32
    %142 = vector.broadcast %cst_61 : f32 to vector<8x1xf32>
    %143 = arith.divf %141, %142 : vector<8x1xf32>
    %144 = vector.broadcast %143 : vector<8x1xf32> to vector<8x32xf32>
    %145 = arith.subf %135, %144 : vector<8x32xf32>
    %146 = arith.mulf %145, %145 : vector<8x32xf32>
    %cst_62 = arith.constant dense<0.000000e+00> : vector<8xf32>
    %147 = vector.multi_reduction <add>, %146, %cst_62 [1] : vector<8x32xf32> to vector<8xf32>
    %148 = vector.shape_cast %147 : vector<8xf32> to vector<8x1xf32>
    %cst_63 = arith.constant 3.200000e+01 : f32
    %149 = vector.broadcast %cst_63 : f32 to vector<8x1xf32>
    %150 = arith.divf %148, %149 : vector<8x1xf32>
    %cst_64 = arith.constant 9.99999974E-6 : f32
    %151 = vector.broadcast %cst_64 : f32 to vector<8x1xf32>
    %152 = arith.addf %150, %151 : vector<8x1xf32>
    %153 = math.rsqrt %152 : vector<8x1xf32>
    %154 = vector.broadcast %153 : vector<8x1xf32> to vector<8x32xf32>
    %155 = arith.mulf %145, %154 : vector<8x32xf32>
    %156 = vector.broadcast %137 : vector<1x32xf32> to vector<8x32xf32>
    %157 = arith.mulf %155, %156 : vector<8x32xf32>
    %158 = vector.broadcast %139 : vector<1x32xf32> to vector<8x32xf32>
    %159 = arith.addf %157, %158 : vector<8x32xf32>
    %c0_65 = arith.constant 0 : index
    %c0_66 = arith.constant 0 : index
    %c0_67 = arith.constant 0 : index
    %160 = vector.load %arg10[%c0_65, %c0_66, %c0_67] : memref<2x32x128xf32, #tpu.memory_space<vmem>>, vector<1x32x128xf32>
    %161 = vector.shape_cast %160 : vector<1x32x128xf32> to vector<32x128xf32>
    %cst_68 = arith.constant dense<0.000000e+00> : vector<8x128xf32>
    %162 = tpu.matmul %159, %161, %cst_68 {dimension_numbers = #tpu.dot_dimension_numbers<[1], [0], [0], [1], [0, 0, 1, 1], [], []>} : vector<8x32xf32>, vector<32x128xf32>, vector<8x128xf32> -> vector<8x128xf32>
    %c0_69 = arith.constant 0 : index
    %c0_70 = arith.constant 0 : index
    %c0_71 = arith.constant 0 : index
    %163 = vector.load %arg11[%c0_69, %c0_70, %c0_71] : memref<2x1x128xf32, #tpu.memory_space<vmem>>, vector<1x1x128xf32>
    %164 = vector.shape_cast %163 : vector<1x1x128xf32> to vector<1x128xf32>
    %165 = vector.broadcast %164 : vector<1x128xf32> to vector<8x128xf32>
    %166 = arith.addf %162, %165 : vector<8x128xf32>
    %167 = arith.mulf %166, %166 : vector<8x128xf32>
    %168 = arith.mulf %166, %167 : vector<8x128xf32>
    %cst_72 = arith.constant 4.471500e-02 : f32
    %169 = vector.broadcast %cst_72 : f32 to vector<8x128xf32>
    %170 = arith.mulf %169, %168 : vector<8x128xf32>
    %171 = arith.addf %166, %170 : vector<8x128xf32>
    %cst_73 = arith.constant 0.797884583 : f32
    %172 = vector.broadcast %cst_73 : f32 to vector<8x128xf32>
    %173 = arith.mulf %172, %171 : vector<8x128xf32>
    %174 = math.tanh %173 : vector<8x128xf32>
    %cst_74 = arith.constant 1.000000e+00 : f32
    %175 = vector.broadcast %cst_74 : f32 to vector<8x128xf32>
    %176 = arith.addf %175, %174 : vector<8x128xf32>
    %cst_75 = arith.constant 5.000000e-01 : f32
    %177 = vector.broadcast %cst_75 : f32 to vector<8x128xf32>
    %178 = arith.mulf %177, %176 : vector<8x128xf32>
    %179 = arith.mulf %166, %178 : vector<8x128xf32>
    %c0_76 = arith.constant 0 : index
    %c0_77 = arith.constant 0 : index
    %c0_78 = arith.constant 0 : index
    %180 = vector.load %arg12[%c0_76, %c0_77, %c0_78] : memref<2x128x32xf32, #tpu.memory_space<vmem>>, vector<1x128x32xf32>
    %181 = vector.shape_cast %180 : vector<1x128x32xf32> to vector<128x32xf32>
    %cst_79 = arith.constant dense<0.000000e+00> : vector<8x32xf32>
    %182 = tpu.matmul %179, %181, %cst_79 {dimension_numbers = #tpu.dot_dimension_numbers<[1], [0], [0], [1], [0, 0, 1, 1], [], []>} : vector<8x128xf32>, vector<128x32xf32>, vector<8x32xf32> -> vector<8x32xf32>
    %183 = arith.addf %135, %182 : vector<8x32xf32>
    %c0_80 = arith.constant 0 : index
    %c0_81 = arith.constant 0 : index
    %c0_82 = arith.constant 0 : index
    %184 = vector.load %arg13[%c0_80, %c0_81, %c0_82] : memref<2x1x32xf32, #tpu.memory_space<vmem>>, vector<1x1x32xf32>
    %185 = vector.shape_cast %184 : vector<1x1x32xf32> to vector<1x32xf32>
    %186 = vector.broadcast %185 : vector<1x32xf32> to vector<8x32xf32>
    %187 = arith.addf %183, %186 : vector<8x32xf32>
    %c1 = arith.constant 1 : index
    %c0_83 = arith.constant 0 : index
    %c0_84 = arith.constant 0 : index
    %188 = vector.load %arg2[%c1, %c0_83, %c0_84] : memref<2x1x32xf32, #tpu.memory_space<vmem>>, vector<1x1x32xf32>
    %189 = vector.shape_cast %188 : vector<1x1x32xf32> to vector<1x32xf32>
    %c1_85 = arith.constant 1 : index
    %c0_86 = arith.constant 0 : index
    %c0_87 = arith.constant 0 : index
    %190 = vector.load %arg3[%c1_85, %c0_86, %c0_87] : memref<2x1x32xf32, #tpu.memory_space<vmem>>, vector<1x1x32xf32>
    %191 = vector.shape_cast %190 : vector<1x1x32xf32> to vector<1x32xf32>
    %cst_88 = arith.constant dense<0.000000e+00> : vector<8xf32>
    %192 = vector.multi_reduction <add>, %187, %cst_88 [1] : vector<8x32xf32> to vector<8xf32>
    %193 = vector.shape_cast %192 : vector<8xf32> to vector<8x1xf32>
    %cst_89 = arith.constant 3.200000e+01 : f32
    %194 = vector.broadcast %cst_89 : f32 to vector<8x1xf32>
    %195 = arith.divf %193, %194 : vector<8x1xf32>
    %196 = vector.broadcast %195 : vector<8x1xf32> to vector<8x32xf32>
    %197 = arith.subf %187, %196 : vector<8x32xf32>
    %198 = arith.mulf %197, %197 : vector<8x32xf32>
    %cst_90 = arith.constant dense<0.000000e+00> : vector<8xf32>
    %199 = vector.multi_reduction <add>, %198, %cst_90 [1] : vector<8x32xf32> to vector<8xf32>
    %200 = vector.shape_cast %199 : vector<8xf32> to vector<8x1xf32>
    %cst_91 = arith.constant 3.200000e+01 : f32
    %201 = vector.broadcast %cst_91 : f32 to vector<8x1xf32>
    %202 = arith.divf %200, %201 : vector<8x1xf32>
    %cst_92 = arith.constant 9.99999974E-6 : f32
    %203 = vector.broadcast %cst_92 : f32 to vector<8x1xf32>
    %204 = arith.addf %202, %203 : vector<8x1xf32>
    %205 = math.rsqrt %204 : vector<8x1xf32>
    %206 = vector.broadcast %205 : vector<8x1xf32> to vector<8x32xf32>
    %207 = arith.mulf %197, %206 : vector<8x32xf32>
    %208 = vector.broadcast %189 : vector<1x32xf32> to vector<8x32xf32>
    %209 = arith.mulf %207, %208 : vector<8x32xf32>
    %210 = vector.broadcast %191 : vector<1x32xf32> to vector<8x32xf32>
    %211 = arith.addf %209, %210 : vector<8x32xf32>
    %c1_93 = arith.constant 1 : index
    %c0_94 = arith.constant 0 : index
    %c0_95 = arith.constant 0 : index
    %212 = vector.load %arg4[%c1_93, %c0_94, %c0_95] : memref<2x32x96xf32, #tpu.memory_space<vmem>>, vector<1x32x96xf32>
    %213 = vector.shape_cast %212 : vector<1x32x96xf32> to vector<32x96xf32>
    %cst_96 = arith.constant dense<0.000000e+00> : vector<8x96xf32>
    %214 = tpu.matmul %211, %213, %cst_96 {dimension_numbers = #tpu.dot_dimension_numbers<[1], [0], [0], [1], [0, 0, 1, 1], [], []>} : vector<8x32xf32>, vector<32x96xf32>, vector<8x96xf32> -> vector<8x96xf32>
    %c1_97 = arith.constant 1 : index
    %c0_98 = arith.constant 0 : index
    %c0_99 = arith.constant 0 : index
    %215 = vector.load %arg5[%c1_97, %c0_98, %c0_99] : memref<2x1x96xf32, #tpu.memory_space<vmem>>, vector<1x1x96xf32>
    %216 = vector.shape_cast %215 : vector<1x1x96xf32> to vector<1x96xf32>
    %217 = vector.broadcast %216 : vector<1x96xf32> to vector<8x96xf32>
    %218 = arith.addf %214, %217 : vector<8x96xf32>
    %c1_100 = arith.constant 1 : index
    %c0_101 = arith.constant 0 : index
    %c0_102 = arith.constant 0 : index
    %219 = vector.load %arg6[%c1_100, %c0_101, %c0_102] : memref<2x32x32xf32, #tpu.memory_space<vmem>>, vector<1x32x32xf32>
    %220 = vector.shape_cast %219 : vector<1x32x32xf32> to vector<32x32xf32>
    %cst_103 = arith.constant 0.000000e+00 : f32
    %221 = vector.broadcast %cst_103 : f32 to vector<8x32xf32>
    %222 = vector.extract_strided_slice %218 {offsets = [0, 0], sizes = [8, 8], strides = [1, 1]} : vector<8x96xf32> to vector<8x8xf32>
    %223 = vector.extract_strided_slice %218 {offsets = [0, 32], sizes = [8, 8], strides = [1, 1]} : vector<8x96xf32> to vector<8x8xf32>
    %224 = vector.extract_strided_slice %218 {offsets = [0, 64], sizes = [8, 8], strides = [1, 1]} : vector<8x96xf32> to vector<8x8xf32>
    %225 = tpu.transpose %223, [1, 0] : vector<8x8xf32> -> vector<8x8xf32>
    %cst_104 = arith.constant dense<0.000000e+00> : vector<8x8xf32>
    %226 = tpu.matmul %222, %225, %cst_104 {dimension_numbers = #tpu.dot_dimension_numbers<[1], [0], [0], [1], [0, 0, 1, 1], [], []>} : vector<8x8xf32>, vector<8x8xf32>, vector<8x8xf32> -> vector<8x8xf32>
    %cst_105 = arith.constant 0.353553385 : f32
    %227 = vector.broadcast %cst_105 : f32 to vector<8x8xf32>
    %228 = arith.mulf %226, %227 : vector<8x8xf32>
    %cst_106 = arith.constant -1.70141173E+38 : f32
    %229 = vector.broadcast %cst_106 : f32 to vector<8x8xf32>
    %230 = arith.select %4, %228, %229 : vector<8x8xi1>, vector<8x8xf32>
    %cst_107 = arith.constant dense<0xFF800000> : vector<8xf32>
    %231 = vector.multi_reduction <maximumf>, %230, %cst_107 [1] : vector<8x8xf32> to vector<8xf32>
    %232 = vector.shape_cast %231 : vector<8xf32> to vector<8x1xf32>
    %233 = vector.broadcast %232 : vector<8x1xf32> to vector<8x8xf32>
    %234 = arith.subf %230, %233 : vector<8x8xf32>
    %235 = math.exp %234 : vector<8x8xf32>
    %cst_108 = arith.constant dense<0.000000e+00> : vector<8xf32>
    %236 = vector.multi_reduction <add>, %235, %cst_108 [1] : vector<8x8xf32> to vector<8xf32>
    %237 = vector.shape_cast %236 : vector<8xf32> to vector<8x1xf32>
    %238 = tpu.reciprocal %237 {approx = true} : vector<8x1xf32> -> vector<8x1xf32>
    %239 = vector.broadcast %238 : vector<8x1xf32> to vector<8x8xf32>
    %240 = arith.mulf %235, %239 : vector<8x8xf32>
    %cst_109 = arith.constant dense<0.000000e+00> : vector<8x8xf32>
    %241 = tpu.matmul %240, %224, %cst_109 {dimension_numbers = #tpu.dot_dimension_numbers<[1], [0], [0], [1], [0, 0, 1, 1], [], []>} : vector<8x8xf32>, vector<8x8xf32>, vector<8x8xf32> -> vector<8x8xf32>
    %242 = vector.extract_strided_slice %220 {offsets = [0, 0], sizes = [8, 32], strides = [1, 1]} : vector<32x32xf32> to vector<8x32xf32>
    %cst_110 = arith.constant dense<0.000000e+00> : vector<8x32xf32>
    %243 = tpu.matmul %241, %242, %cst_110 {dimension_numbers = #tpu.dot_dimension_numbers<[1], [0], [0], [1], [0, 0, 1, 1], [], []>} : vector<8x8xf32>, vector<8x32xf32>, vector<8x32xf32> -> vector<8x32xf32>
    %244 = arith.addf %221, %243 : vector<8x32xf32>
    %245 = vector.extract_strided_slice %218 {offsets = [0, 8], sizes = [8, 8], strides = [1, 1]} : vector<8x96xf32> to vector<8x8xf32>
    %246 = vector.extract_strided_slice %218 {offsets = [0, 40], sizes = [8, 8], strides = [1, 1]} : vector<8x96xf32> to vector<8x8xf32>
    %247 = vector.extract_strided_slice %218 {offsets = [0, 72], sizes = [8, 8], strides = [1, 1]} : vector<8x96xf32> to vector<8x8xf32>
    %248 = tpu.transpose %246, [1, 0] : vector<8x8xf32> -> vector<8x8xf32>
    %cst_111 = arith.constant dense<0.000000e+00> : vector<8x8xf32>
    %249 = tpu.matmul %245, %248, %cst_111 {dimension_numbers = #tpu.dot_dimension_numbers<[1], [0], [0], [1], [0, 0, 1, 1], [], []>} : vector<8x8xf32>, vector<8x8xf32>, vector<8x8xf32> -> vector<8x8xf32>
    %cst_112 = arith.constant 0.353553385 : f32
    %250 = vector.broadcast %cst_112 : f32 to vector<8x8xf32>
    %251 = arith.mulf %249, %250 : vector<8x8xf32>
    %cst_113 = arith.constant -1.70141173E+38 : f32
    %252 = vector.broadcast %cst_113 : f32 to vector<8x8xf32>
    %253 = arith.select %4, %251, %252 : vector<8x8xi1>, vector<8x8xf32>
    %cst_114 = arith.constant dense<0xFF800000> : vector<8xf32>
    %254 = vector.multi_reduction <maximumf>, %253, %cst_114 [1] : vector<8x8xf32> to vector<8xf32>
    %255 = vector.shape_cast %254 : vector<8xf32> to vector<8x1xf32>
    %256 = vector.broadcast %255 : vector<8x1xf32> to vector<8x8xf32>
    %257 = arith.subf %253, %256 : vector<8x8xf32>
    %258 = math.exp %257 : vector<8x8xf32>
    %cst_115 = arith.constant dense<0.000000e+00> : vector<8xf32>
    %259 = vector.multi_reduction <add>, %258, %cst_115 [1] : vector<8x8xf32> to vector<8xf32>
    %260 = vector.shape_cast %259 : vector<8xf32> to vector<8x1xf32>
    %261 = tpu.reciprocal %260 {approx = true} : vector<8x1xf32> -> vector<8x1xf32>
    %262 = vector.broadcast %261 : vector<8x1xf32> to vector<8x8xf32>
    %263 = arith.mulf %258, %262 : vector<8x8xf32>
    %cst_116 = arith.constant dense<0.000000e+00> : vector<8x8xf32>
    %264 = tpu.matmul %263, %247, %cst_116 {dimension_numbers = #tpu.dot_dimension_numbers<[1], [0], [0], [1], [0, 0, 1, 1], [], []>} : vector<8x8xf32>, vector<8x8xf32>, vector<8x8xf32> -> vector<8x8xf32>
    %265 = vector.extract_strided_slice %220 {offsets = [8, 0], sizes = [8, 32], strides = [1, 1]} : vector<32x32xf32> to vector<8x32xf32>
    %cst_117 = arith.constant dense<0.000000e+00> : vector<8x32xf32>
    %266 = tpu.matmul %264, %265, %cst_117 {dimension_numbers = #tpu.dot_dimension_numbers<[1], [0], [0], [1], [0, 0, 1, 1], [], []>} : vector<8x8xf32>, vector<8x32xf32>, vector<8x32xf32> -> vector<8x32xf32>
    %267 = arith.addf %244, %266 : vector<8x32xf32>
    %268 = vector.extract_strided_slice %218 {offsets = [0, 16], sizes = [8, 8], strides = [1, 1]} : vector<8x96xf32> to vector<8x8xf32>
    %269 = vector.extract_strided_slice %218 {offsets = [0, 48], sizes = [8, 8], strides = [1, 1]} : vector<8x96xf32> to vector<8x8xf32>
    %270 = vector.extract_strided_slice %218 {offsets = [0, 80], sizes = [8, 8], strides = [1, 1]} : vector<8x96xf32> to vector<8x8xf32>
    %271 = tpu.transpose %269, [1, 0] : vector<8x8xf32> -> vector<8x8xf32>
    %cst_118 = arith.constant dense<0.000000e+00> : vector<8x8xf32>
    %272 = tpu.matmul %268, %271, %cst_118 {dimension_numbers = #tpu.dot_dimension_numbers<[1], [0], [0], [1], [0, 0, 1, 1], [], []>} : vector<8x8xf32>, vector<8x8xf32>, vector<8x8xf32> -> vector<8x8xf32>
    %cst_119 = arith.constant 0.353553385 : f32
    %273 = vector.broadcast %cst_119 : f32 to vector<8x8xf32>
    %274 = arith.mulf %272, %273 : vector<8x8xf32>
    %cst_120 = arith.constant -1.70141173E+38 : f32
    %275 = vector.broadcast %cst_120 : f32 to vector<8x8xf32>
    %276 = arith.select %4, %274, %275 : vector<8x8xi1>, vector<8x8xf32>
    %cst_121 = arith.constant dense<0xFF800000> : vector<8xf32>
    %277 = vector.multi_reduction <maximumf>, %276, %cst_121 [1] : vector<8x8xf32> to vector<8xf32>
    %278 = vector.shape_cast %277 : vector<8xf32> to vector<8x1xf32>
    %279 = vector.broadcast %278 : vector<8x1xf32> to vector<8x8xf32>
    %280 = arith.subf %276, %279 : vector<8x8xf32>
    %281 = math.exp %280 : vector<8x8xf32>
    %cst_122 = arith.constant dense<0.000000e+00> : vector<8xf32>
    %282 = vector.multi_reduction <add>, %281, %cst_122 [1] : vector<8x8xf32> to vector<8xf32>
    %283 = vector.shape_cast %282 : vector<8xf32> to vector<8x1xf32>
    %284 = tpu.reciprocal %283 {approx = true} : vector<8x1xf32> -> vector<8x1xf32>
    %285 = vector.broadcast %284 : vector<8x1xf32> to vector<8x8xf32>
    %286 = arith.mulf %281, %285 : vector<8x8xf32>
    %cst_123 = arith.constant dense<0.000000e+00> : vector<8x8xf32>
    %287 = tpu.matmul %286, %270, %cst_123 {dimension_numbers = #tpu.dot_dimension_numbers<[1], [0], [0], [1], [0, 0, 1, 1], [], []>} : vector<8x8xf32>, vector<8x8xf32>, vector<8x8xf32> -> vector<8x8xf32>
    %288 = vector.extract_strided_slice %220 {offsets = [16, 0], sizes = [8, 32], strides = [1, 1]} : vector<32x32xf32> to vector<8x32xf32>
    %cst_124 = arith.constant dense<0.000000e+00> : vector<8x32xf32>
    %289 = tpu.matmul %287, %288, %cst_124 {dimension_numbers = #tpu.dot_dimension_numbers<[1], [0], [0], [1], [0, 0, 1, 1], [], []>} : vector<8x8xf32>, vector<8x32xf32>, vector<8x32xf32> -> vector<8x32xf32>
    %290 = arith.addf %267, %289 : vector<8x32xf32>
    %291 = vector.extract_strided_slice %218 {offsets = [0, 24], sizes = [8, 8], strides = [1, 1]} : vector<8x96xf32> to vector<8x8xf32>
    %292 = vector.extract_strided_slice %218 {offsets = [0, 56], sizes = [8, 8], strides = [1, 1]} : vector<8x96xf32> to vector<8x8xf32>
    %293 = vector.extract_strided_slice %218 {offsets = [0, 88], sizes = [8, 8], strides = [1, 1]} : vector<8x96xf32> to vector<8x8xf32>
    %294 = tpu.transpose %292, [1, 0] : vector<8x8xf32> -> vector<8x8xf32>
    %cst_125 = arith.constant dense<0.000000e+00> : vector<8x8xf32>
    %295 = tpu.matmul %291, %294, %cst_125 {dimension_numbers = #tpu.dot_dimension_numbers<[1], [0], [0], [1], [0, 0, 1, 1], [], []>} : vector<8x8xf32>, vector<8x8xf32>, vector<8x8xf32> -> vector<8x8xf32>
    %cst_126 = arith.constant 0.353553385 : f32
    %296 = vector.broadcast %cst_126 : f32 to vector<8x8xf32>
    %297 = arith.mulf %295, %296 : vector<8x8xf32>
    %cst_127 = arith.constant -1.70141173E+38 : f32
    %298 = vector.broadcast %cst_127 : f32 to vector<8x8xf32>
    %299 = arith.select %4, %297, %298 : vector<8x8xi1>, vector<8x8xf32>
    %cst_128 = arith.constant dense<0xFF800000> : vector<8xf32>
    %300 = vector.multi_reduction <maximumf>, %299, %cst_128 [1] : vector<8x8xf32> to vector<8xf32>
    %301 = vector.shape_cast %300 : vector<8xf32> to vector<8x1xf32>
    %302 = vector.broadcast %301 : vector<8x1xf32> to vector<8x8xf32>
    %303 = arith.subf %299, %302 : vector<8x8xf32>
    %304 = math.exp %303 : vector<8x8xf32>
    %cst_129 = arith.constant dense<0.000000e+00> : vector<8xf32>
    %305 = vector.multi_reduction <add>, %304, %cst_129 [1] : vector<8x8xf32> to vector<8xf32>
    %306 = vector.shape_cast %305 : vector<8xf32> to vector<8x1xf32>
    %307 = tpu.reciprocal %306 {approx = true} : vector<8x1xf32> -> vector<8x1xf32>
    %308 = vector.broadcast %307 : vector<8x1xf32> to vector<8x8xf32>
    %309 = arith.mulf %304, %308 : vector<8x8xf32>
    %cst_130 = arith.constant dense<0.000000e+00> : vector<8x8xf32>
    %310 = tpu.matmul %309, %293, %cst_130 {dimension_numbers = #tpu.dot_dimension_numbers<[1], [0], [0], [1], [0, 0, 1, 1], [], []>} : vector<8x8xf32>, vector<8x8xf32>, vector<8x8xf32> -> vector<8x8xf32>
    %311 = vector.extract_strided_slice %220 {offsets = [24, 0], sizes = [8, 32], strides = [1, 1]} : vector<32x32xf32> to vector<8x32xf32>
    %cst_131 = arith.constant dense<0.000000e+00> : vector<8x32xf32>
    %312 = tpu.matmul %310, %311, %cst_131 {dimension_numbers = #tpu.dot_dimension_numbers<[1], [0], [0], [1], [0, 0, 1, 1], [], []>} : vector<8x8xf32>, vector<8x32xf32>, vector<8x32xf32> -> vector<8x32xf32>
    %313 = arith.addf %290, %312 : vector<8x32xf32>
    %314 = arith.addf %187, %313 : vector<8x32xf32>
    %c1_132 = arith.constant 1 : index
    %c0_133 = arith.constant 0 : index
    %c0_134 = arith.constant 0 : index
    %315 = vector.load %arg7[%c1_132, %c0_133, %c0_134] : memref<2x1x32xf32, #tpu.memory_space<vmem>>, vector<1x1x32xf32>
    %316 = vector.shape_cast %315 : vector<1x1x32xf32> to vector<1x32xf32>
    %317 = vector.broadcast %316 : vector<1x32xf32> to vector<8x32xf32>
    %318 = arith.addf %314, %317 : vector<8x32xf32>
    %c1_135 = arith.constant 1 : index
    %c0_136 = arith.constant 0 : index
    %c0_137 = arith.constant 0 : index
    %319 = vector.load %arg8[%c1_135, %c0_136, %c0_137] : memref<2x1x32xf32, #tpu.memory_space<vmem>>, vector<1x1x32xf32>
    %320 = vector.shape_cast %319 : vector<1x1x32xf32> to vector<1x32xf32>
    %c1_138 = arith.constant 1 : index
    %c0_139 = arith.constant 0 : index
    %c0_140 = arith.constant 0 : index
    %321 = vector.load %arg9[%c1_138, %c0_139, %c0_140] : memref<2x1x32xf32, #tpu.memory_space<vmem>>, vector<1x1x32xf32>
    %322 = vector.shape_cast %321 : vector<1x1x32xf32> to vector<1x32xf32>
    %cst_141 = arith.constant dense<0.000000e+00> : vector<8xf32>
    %323 = vector.multi_reduction <add>, %318, %cst_141 [1] : vector<8x32xf32> to vector<8xf32>
    %324 = vector.shape_cast %323 : vector<8xf32> to vector<8x1xf32>
    %cst_142 = arith.constant 3.200000e+01 : f32
    %325 = vector.broadcast %cst_142 : f32 to vector<8x1xf32>
    %326 = arith.divf %324, %325 : vector<8x1xf32>
    %327 = vector.broadcast %326 : vector<8x1xf32> to vector<8x32xf32>
    %328 = arith.subf %318, %327 : vector<8x32xf32>
    %329 = arith.mulf %328, %328 : vector<8x32xf32>
    %cst_143 = arith.constant dense<0.000000e+00> : vector<8xf32>
    %330 = vector.multi_reduction <add>, %329, %cst_143 [1] : vector<8x32xf32> to vector<8xf32>
    %331 = vector.shape_cast %330 : vector<8xf32> to vector<8x1xf32>
    %cst_144 = arith.constant 3.200000e+01 : f32
    %332 = vector.broadcast %cst_144 : f32 to vector<8x1xf32>
    %333 = arith.divf %331, %332 : vector<8x1xf32>
    %cst_145 = arith.constant 9.99999974E-6 : f32
    %334 = vector.broadcast %cst_145 : f32 to vector<8x1xf32>
    %335 = arith.addf %333, %334 : vector<8x1xf32>
    %336 = math.rsqrt %335 : vector<8x1xf32>
    %337 = vector.broadcast %336 : vector<8x1xf32> to vector<8x32xf32>
    %338 = arith.mulf %328, %337 : vector<8x32xf32>
    %339 = vector.broadcast %320 : vector<1x32xf32> to vector<8x32xf32>
    %340 = arith.mulf %338, %339 : vector<8x32xf32>
    %341 = vector.broadcast %322 : vector<1x32xf32> to vector<8x32xf32>
    %342 = arith.addf %340, %341 : vector<8x32xf32>
    %c1_146 = arith.constant 1 : index
    %c0_147 = arith.constant 0 : index
    %c0_148 = arith.constant 0 : index
    %343 = vector.load %arg10[%c1_146, %c0_147, %c0_148] : memref<2x32x128xf32, #tpu.memory_space<vmem>>, vector<1x32x128xf32>
    %344 = vector.shape_cast %343 : vector<1x32x128xf32> to vector<32x128xf32>
    %cst_149 = arith.constant dense<0.000000e+00> : vector<8x128xf32>
    %345 = tpu.matmul %342, %344, %cst_149 {dimension_numbers = #tpu.dot_dimension_numbers<[1], [0], [0], [1], [0, 0, 1, 1], [], []>} : vector<8x32xf32>, vector<32x128xf32>, vector<8x128xf32> -> vector<8x128xf32>
    %c1_150 = arith.constant 1 : index
    %c0_151 = arith.constant 0 : index
    %c0_152 = arith.constant 0 : index
    %346 = vector.load %arg11[%c1_150, %c0_151, %c0_152] : memref<2x1x128xf32, #tpu.memory_space<vmem>>, vector<1x1x128xf32>
    %347 = vector.shape_cast %346 : vector<1x1x128xf32> to vector<1x128xf32>
    %348 = vector.broadcast %347 : vector<1x128xf32> to vector<8x128xf32>
    %349 = arith.addf %345, %348 : vector<8x128xf32>
    %350 = arith.mulf %349, %349 : vector<8x128xf32>
    %351 = arith.mulf %349, %350 : vector<8x128xf32>
    %cst_153 = arith.constant 4.471500e-02 : f32
    %352 = vector.broadcast %cst_153 : f32 to vector<8x128xf32>
    %353 = arith.mulf %352, %351 : vector<8x128xf32>
    %354 = arith.addf %349, %353 : vector<8x128xf32>
    %cst_154 = arith.constant 0.797884583 : f32
    %355 = vector.broadcast %cst_154 : f32 to vector<8x128xf32>
    %356 = arith.mulf %355, %354 : vector<8x128xf32>
    %357 = math.tanh %356 : vector<8x128xf32>
    %cst_155 = arith.constant 1.000000e+00 : f32
    %358 = vector.broadcast %cst_155 : f32 to vector<8x128xf32>
    %359 = arith.addf %358, %357 : vector<8x128xf32>
    %cst_156 = arith.constant 5.000000e-01 : f32
    %360 = vector.broadcast %cst_156 : f32 to vector<8x128xf32>
    %361 = arith.mulf %360, %359 : vector<8x128xf32>
    %362 = arith.mulf %349, %361 : vector<8x128xf32>
    %c1_157 = arith.constant 1 : index
    %c0_158 = arith.constant 0 : index
    %c0_159 = arith.constant 0 : index
    %363 = vector.load %arg12[%c1_157, %c0_158, %c0_159] : memref<2x128x32xf32, #tpu.memory_space<vmem>>, vector<1x128x32xf32>
    %364 = vector.shape_cast %363 : vector<1x128x32xf32> to vector<128x32xf32>
    %cst_160 = arith.constant dense<0.000000e+00> : vector<8x32xf32>
    %365 = tpu.matmul %362, %364, %cst_160 {dimension_numbers = #tpu.dot_dimension_numbers<[1], [0], [0], [1], [0, 0, 1, 1], [], []>} : vector<8x128xf32>, vector<128x32xf32>, vector<8x32xf32> -> vector<8x32xf32>
    %366 = arith.addf %318, %365 : vector<8x32xf32>
    %c1_161 = arith.constant 1 : index
    %c0_162 = arith.constant 0 : index
    %c0_163 = arith.constant 0 : index
    %367 = vector.load %arg13[%c1_161, %c0_162, %c0_163] : memref<2x1x32xf32, #tpu.memory_space<vmem>>, vector<1x1x32xf32>
    %368 = vector.shape_cast %367 : vector<1x1x32xf32> to vector<1x32xf32>
    %369 = vector.broadcast %368 : vector<1x32xf32> to vector<8x32xf32>
    %370 = arith.addf %366, %369 : vector<8x32xf32>
    %c0_164 = arith.constant 0 : index
    %c0_165 = arith.constant 0 : index
    %371 = vector.load %arg14[%c0_164, %c0_165] : memref<1x32xf32, #tpu.memory_space<vmem>>, vector<1x32xf32>
    %c0_166 = arith.constant 0 : index
    %c0_167 = arith.constant 0 : index
    %372 = vector.load %arg15[%c0_166, %c0_167] : memref<1x32xf32, #tpu.memory_space<vmem>>, vector<1x32xf32>
    %cst_168 = arith.constant dense<0.000000e+00> : vector<8xf32>
    %373 = vector.multi_reduction <add>, %370, %cst_168 [1] : vector<8x32xf32> to vector<8xf32>
    %374 = vector.shape_cast %373 : vector<8xf32> to vector<8x1xf32>
    %cst_169 = arith.constant 3.200000e+01 : f32
    %375 = vector.broadcast %cst_169 : f32 to vector<8x1xf32>
    %376 = arith.divf %374, %375 : vector<8x1xf32>
    %377 = vector.broadcast %376 : vector<8x1xf32> to vector<8x32xf32>
    %378 = arith.subf %370, %377 : vector<8x32xf32>
    %379 = arith.mulf %378, %378 : vector<8x32xf32>
    %cst_170 = arith.constant dense<0.000000e+00> : vector<8xf32>
    %380 = vector.multi_reduction <add>, %379, %cst_170 [1] : vector<8x32xf32> to vector<8xf32>
    %381 = vector.shape_cast %380 : vector<8xf32> to vector<8x1xf32>
    %cst_171 = arith.constant 3.200000e+01 : f32
    %382 = vector.broadcast %cst_171 : f32 to vector<8x1xf32>
    %383 = arith.divf %381, %382 : vector<8x1xf32>
    %cst_172 = arith.constant 9.99999974E-6 : f32
    %384 = vector.broadcast %cst_172 : f32 to vector<8x1xf32>
    %385 = arith.addf %383, %384 : vector<8x1xf32>
    %386 = math.rsqrt %385 : vector<8x1xf32>
    %387 = vector.broadcast %386 : vector<8x1xf32> to vector<8x32xf32>
    %388 = arith.mulf %378, %387 : vector<8x32xf32>
    %389 = vector.broadcast %371 : vector<1x32xf32> to vector<8x32xf32>
    %390 = arith.mulf %388, %389 : vector<8x32xf32>
    %391 = vector.broadcast %372 : vector<1x32xf32> to vector<8x32xf32>
    %392 = arith.addf %390, %391 : vector<8x32xf32>
    %393 = vector.extract_strided_slice %392 {offsets = [7, 0], sizes = [1, 32], strides = [1, 1]} : vector<8x32xf32> to vector<1x32xf32>
    %c0_173 = arith.constant 0 : index
    %c0_174 = arith.constant 0 : index
    %394 = vector.load %arg16[%c0_173, %c0_174] : memref<32x2xf32, #tpu.memory_space<vmem>>, vector<32x2xf32>
    %cst_175 = arith.constant dense<0.000000e+00> : vector<1x2xf32>
    %395 = tpu.matmul %393, %394, %cst_175 {dimension_numbers = #tpu.dot_dimension_numbers<[1], [0], [0], [1], [0, 0, 1, 1], [], []>} : vector<1x32xf32>, vector<32x2xf32>, vector<1x2xf32> -> vector<1x2xf32>
    %cst_176 = arith.constant dense<0xFF800000> : vector<1xf32>
    %396 = vector.multi_reduction <maximumf>, %395, %cst_176 [1] : vector<1x2xf32> to vector<1xf32>
    %397 = vector.shape_cast %396 : vector<1xf32> to vector<1x1xf32>
    %398 = vector.broadcast %397 : vector<1x1xf32> to vector<1x2xf32>
    %399 = arith.subf %395, %398 : vector<1x2xf32>
    %400 = math.exp %399 : vector<1x2xf32>
    %cst_177 = arith.constant dense<0.000000e+00> : vector<1xf32>
    %401 = vector.multi_reduction <add>, %400, %cst_177 [1] : vector<1x2xf32> to vector<1xf32>
    %402 = vector.shape_cast %401 : vector<1xf32> to vector<1x1xf32>
    %403 = math.log %402 : vector<1x1xf32>
    %404 = vector.broadcast %403 : vector<1x1xf32> to vector<1x2xf32>
    %405 = arith.subf %399, %404 : vector<1x2xf32>
    %c0_178 = arith.constant 0 : index
    %c0_179 = arith.constant 0 : index
    %c0_180 = arith.constant 0 : index
    %406 = vector.load %arg17[%c0_178, %c0_179, %c0_180] : memref<1x1x2xf32, #tpu.memory_space<vmem>>, vector<1x1x2xf32>
    %407 = vector.shape_cast %406 : vector<1x1x2xf32> to vector<1x2xf32>
    %408 = vector.shape_cast %405 : vector<1x2xf32> to vector<1x1x2xf32>
    tpu.vector_store %arg17[%c0_178, %c0_179, %c0_180], %408 {strides = array<i32>} : memref<1x1x2xf32, #tpu.memory_space<vmem>>, vector<1x1x2xf32>,
    return
  }
  func.func @transform_0(%arg0: i32) -> (i32, i32, i32) {
    %c0_i32 = arith.constant 0 : i32
    %c0_i32_0 = arith.constant 0 : i32
    %c0_i32_1 = arith.constant 0 : i32
    return %arg0, %c0_i32, %c0_i32_0 : i32, i32, i32
  }
  func.func @transform_1(%arg0: i32) -> (i32, i32, i32) {
    %c0_i32 = arith.constant 0 : i32
    %c0_i32_0 = arith.constant 0 : i32
    %c0_i32_1 = arith.constant 0 : i32
    %c0_i32_2 = arith.constant 0 : i32
    return %c0_i32, %c0_i32_0, %c0_i32_1 : i32, i32, i32
  }
  func.func @transform_2(%arg0: i32) -> (i32, i32, i32) {
    %c0_i32 = arith.constant 0 : i32
    %c0_i32_0 = arith.constant 0 : i32
    %c0_i32_1 = arith.constant 0 : i32
    %c0_i32_2 = arith.constant 0 : i32
    return %c0_i32, %c0_i32_0, %c0_i32_1 : i32, i32, i32
  }
  func.func @transform_3(%arg0: i32) -> (i32, i32, i32) {
    %c0_i32 = arith.constant 0 : i32
    %c0_i32_0 = arith.constant 0 : i32
    %c0_i32_1 = arith.constant 0 : i32
    %c0_i32_2 = arith.constant 0 : i32
    return %c0_i32, %c0_i32_0, %c0_i32_1 : i32, i32, i32
  }
  func.func @transform_4(%arg0: i32) -> (i32, i32, i32) {
    %c0_i32 = arith.constant 0 : i32
    %c0_i32_0 = arith.constant 0 : i32
    %c0_i32_1 = arith.constant 0 : i32
    %c0_i32_2 = arith.constant 0 : i32
    return %c0_i32, %c0_i32_0, %c0_i32_1 : i32, i32, i32
  }
  func.func @transform_5(%arg0: i32) -> (i32, i32, i32) {
    %c0_i32 = arith.constant 0 : i32
    %c0_i32_0 = arith.constant 0 : i32
    %c0_i32_1 = arith.constant 0 : i32
    %c0_i32_2 = arith.constant 0 : i32
    return %c0_i32, %c0_i32_0, %c0_i32_1 : i32, i32, i32
  }
  func.func @transform_6(%arg0: i32) -> (i32, i32, i32) {
    %c0_i32 = arith.constant 0 : i32
    %c0_i32_0 = arith.constant 0 : i32
    %c0_i32_1 = arith.constant 0 : i32
    %c0_i32_2 = arith.constant 0 : i32
    return %c0_i32, %c0_i32_0, %c0_i32_1 : i32, i32, i32
  }
  func.func @transform_7(%arg0: i32) -> (i32, i32, i32) {
    %c0_i32 = arith.constant 0 : i32
    %c0_i32_0 = arith.constant 0 : i32
    %c0_i32_1 = arith.constant 0 : i32
    %c0_i32_2 = arith.constant 0 : i32
    return %c0_i32, %c0_i32_0, %c0_i32_1 : i32, i32, i32
  }
  func.func @transform_8(%arg0: i32) -> (i32, i32, i32) {
    %c0_i32 = arith.constant 0 : i32
    %c0_i32_0 = arith.constant 0 : i32
    %c0_i32_1 = arith.constant 0 : i32
    %c0_i32_2 = arith.constant 0 : i32
    return %c0_i32, %c0_i32_0, %c0_i32_1 : i32, i32, i32
  }
  func.func @transform_9(%arg0: i32) -> (i32, i32, i32) {
    %c0_i32 = arith.constant 0 : i32
    %c0_i32_0 = arith.constant 0 : i32
    %c0_i32_1 = arith.constant 0 : i32
    %c0_i32_2 = arith.constant 0 : i32
    return %c0_i32, %c0_i32_0, %c0_i32_1 : i32, i32, i32
  }
  func.func @transform_10(%arg0: i32) -> (i32, i32, i32) {
    %c0_i32 = arith.constant 0 : i32
    %c0_i32_0 = arith.constant 0 : i32
    %c0_i32_1 = arith.constant 0 : i32
    %c0_i32_2 = arith.constant 0 : i32
    return %c0_i32, %c0_i32_0, %c0_i32_1 : i32, i32, i32
  }
  func.func @transform_11(%arg0: i32) -> (i32, i32, i32) {
    %c0_i32 = arith.constant 0 : i32
    %c0_i32_0 = arith.constant 0 : i32
    %c0_i32_1 = arith.constant 0 : i32
    %c0_i32_2 = arith.constant 0 : i32
    return %c0_i32, %c0_i32_0, %c0_i32_1 : i32, i32, i32
  }
  func.func @transform_12(%arg0: i32) -> (i32, i32, i32) {
    %c0_i32 = arith.constant 0 : i32
    %c0_i32_0 = arith.constant 0 : i32
    %c0_i32_1 = arith.constant 0 : i32
    %c0_i32_2 = arith.constant 0 : i32
    return %c0_i32, %c0_i32_0, %c0_i32_1 : i32, i32, i32
  }
  func.func @transform_13(%arg0: i32) -> (i32, i32) {
    %c0_i32 = arith.constant 0 : i32
    %c0_i32_0 = arith.constant 0 : i32
    %c0_i32_1 = arith.constant 0 : i32
    return %c0_i32, %c0_i32_0 : i32, i32
  }
  func.func @transform_14(%arg0: i32) -> (i32, i32) {
    %c0_i32 = arith.constant 0 : i32
    %c0_i32_0 = arith.constant 0 : i32
    %c0_i32_1 = arith.constant 0 : i32
    return %c0_i32, %c0_i32_0 : i32, i32
  }
  func.func @transform_15(%arg0: i32) -> (i32, i32) {
    %c0_i32 = arith.constant 0 : i32
    %c0_i32_0 = arith.constant 0 : i32
    %c0_i32_1 = arith.constant 0 : i32
    return %c0_i32, %c0_i32_0 : i32, i32
  }
  func.func @transform_16(%arg0: i32) -> (i32, i32, i32) {
    %c0_i32 = arith.constant 0 : i32
    %c0_i32_0 = arith.constant 0 : i32
    %c0_i32_1 = arith.constant 0 : i32
    return %arg0, %c0_i32, %c0_i32_0 : i32, i32, i32
  }
}

</mosaic_0001>

<bundles_post_ra>
// kernel: gpt2_forward.1
= control target key start
LH: loop header
LB: loop body
LE: loop exit
PB: predicated region body
PF: predicated region fallthrough
CT: control target
= control target key end

     0   :  { %s2630_s0 = inlined_call_operand.vmem [shape: f32[2,8,32], index: 0, kind: input, shape index: {}]   ;;  %s2631_s1 = inlined_call_operand.vmem [shape: f32[2,1,32], index: 1, kind: input, shape index: {}]   ;;  %s2632_s2 = inlined_call_operand.vmem [shape: f32[2,1,32], index: 2, kind: input, shape index: {}]   ;;  %s2633_s3 = inlined_call_operand.vmem [shape: f32[2,32,96], index: 3, kind: input, shape index: {}]   ;;  %s2634_s4 = inlined_call_operand.vmem [shape: f32[2,1,96], index: 4, kind: input, shape index: {}]   ;;  %s2635_s5 = inlined_call_operand.vmem [shape: f32[2,32,32], index: 5, kind: input, shape index: {}]   ;;  %s2636_s6 = inlined_call_operand.vmem [shape: f32[2,1,32], index: 6, kind: input, shape index: {}]   ;;  %s2637_s7 = inlined_call_operand.vmem [shape: f32[2,1,32], index: 7, kind: input, shape index: {}]   ;;  %s2638_s8 = inlined_call_operand.vmem [shape: f32[2,1,32], index: 8, kind: input, shape index: {}]   ;;  %s2639_s9 = inlined_call_operand.vmem [shape: f32[2,32,128], index: 9, kind: input, shape index: {}]   ;;  %s2640_s10 = inlined_call_operand.vmem [shape: f32[2,1,128], index: 10, kind: input, shape index: {}]   ;;  %s2641_s11 = inlined_call_operand.vmem [shape: f32[2,128,32], index: 11, kind: input, shape index: {}]   ;;  %s2642_s12 = inlined_call_operand.vmem [shape: f32[2,1,32], index: 12, kind: input, shape index: {}]   ;;  %s2643_s13 = inlined_call_operand.vmem [shape: f32[1,32], index: 13, kind: input, shape index: {}]   ;;  %s2644_s14 = inlined_call_operand.vmem [shape: f32[1,32], index: 14, kind: input, shape index: {}]   ;;  %s2645_s15 = inlined_call_operand.vmem [shape: f32[32,2], index: 15, kind: input, shape index: {}]   ;;  %s2646_s16 = inlined_call_operand.hbm [shape: f32[2,1,2], index: 16, kind: output, shape index: {}]  }
   0x1   :  { %2662 = sst [smem:[#allocation9_spill]] %s2630_s0 }
   0x2   :  { %2663 = sst [smem:[#allocation10_spill]] %s2631_s1 }
   0x3   :  { %21 = vsyncpa [#allocation3], 0 }
   0x4   :  { %23 = vsyncpa [#allocation3 + $0x1], 0  ;;  %s2143_s21 = smov 0   ;;  %s2145_s22 = smov 0  }
   0x5   :  { %s2147_s23 = smov 0   ;;  %s2149_s24 = smov 0  }
   0x6 LB: > { %2664 = sst [smem:[#allocation5_spill]] %s2040_s23  ;;  %s2164_s25 = sadd.s32 4294967295, %s2044_s24   ;;  %s2044_s24 = sphi %s2149_s24, %s2686_s24   ;;  %s2040_s23 = sphi %s2147_s23, %s2688_s23   ;;  %s2036_s22 = sphi %s2145_s22, %s2690_s22   ;;  %s2032_s21 = sphi %s2143_s21, %s2689_s21  }
   0x7   : > { %s1781_s26 = sadd.s32 4294967294, %s2044_s24   ;;  %s2168_s27 = sadd.s32 1, %s2044_s24  }
   0x8   : > { %2665 = sst [smem:[#allocation6_spill]] %s2168_s27  ;;  %s377_s28 = sadd.s32 1, %s2040_s23 }
   0x9   : > { %s374_s29 = ssub.s32 %s2044_s24, %s2168_s27  ;;  %p387_p0 = scmp.ne.s32.totalorder %s2040_s23, %s2036_s22 }
   0xa   : > { %p375_p1 = scmp.eq.s32.totalorder %s374_s29, 0  ;;  %p388_p2 = scmp.eq.s32.totalorder %s2164_s25, 1 }
   0xb   : > { %p393_p3 = scmp.ne.s32.totalorder %s2036_s22, %s2032_s21  ;;  %p394_p4 = scmp.eq.s32.totalorder %s1781_s26, 1 }
   0xc   : > { %s2179_s30 = scalar_select %p375_p1, %s2040_s23, %s377_s28  }
   0xd   : > { %p2181_p5 = por %p388_p2, %p387_p0  ;;  %p2185_p6 = por %p394_p4, %p393_p3 }
   0xe   : > { %2666 = sst [smem:[#allocation7_spill]] %s2179_s30  ;;  %p1784_p7 = scmp.ge.s32.totalorder %s2044_s24, 1 }
   0xf   : > { %s2668_s17 = scalar_select %p2185_p6, 1, 0 }
  0x10   : > { %p464_p8 = scmp.lt.s32.totalorder %s2044_s24, 3 }
  0x11   : > { %2669 = sst [smem:[#allocation8_spill]] %s2668_s17 }
  0x12   : > { %p465_p9 = pnand %p1784_p7, %p464_p8 }
  0x13   : > { %p512_p10 = scmp.lt.s32.totalorder (!%p465_p9), %s2164_s25, 1  ;;  %s2670_s28 = sld [smem:[#allocation9_spill]] (!%p465_p9) }
  0x14   : > { %468 = sbr.rel (%p465_p9) target bundleno = 5334 (0x14d6), region = 84  ;;  %s2671_s1 = sld [smem:[#allocation10_spill]] (!%p465_p9) }
  0x15   : > { %s2650_s23 = smov (!%p465_p9), 72   ;;  %s2654_s30 = smov (!%p465_p9), 112  }
  0x16   : > { %s2658_s20 = smov (!%p465_p9), 120   ;;  %s2649_s26 = smov (!%p465_p9), 80  }
  0x17   : > { %s2676_s27 = smov (!%p465_p9), 96   ;;  %s2677_s17 = smov (!%p465_p9), 56  }
  0x19   : > { %s513_s18 = scalar_select %p512_p10, %s2164_s25, 1  ;;  %vm524_vm0 = vcmask 261120   ;;  %v2046_v2 = vmov 32.0   ;;  %v565_v14 = vld [vmem:[%s2633_s3 + $0x18] sm:$0xff]  ;;  %v564_v15 = vld [vmem:[%s2633_s3 + $0x10] sm:$0xff]  ;;  %v563_v16 = vld [vmem:[%s2633_s3 + $0x8] sm:$0xff]  ;;  %v517_v39 = vlaneseq }
  0x1a   : > { %1930 = vrcp.f32 %v2046_v2  ;;  %585 = vmatpush.msra.mxu0 %v565_v14  ;;  %v562_v17 = vld [vmem:[%s2633_s3] sm:$0xff]  ;;  %vm600_vm5 = vcmask 64512  }
  0x1b   : > { %s1785_s19 = sshll.u32 %s513_s18, 3  ;;  %v1912_v27 = vld [vmem:[%s2671_s1] ss:$0 sm:$0xff]  ;;  %s2656_s18 = smov 96   ;;  %v518_v40 = vshrl.u32 %v517_v39, 7  ;;  %v520_v41 = vand.u32 127, %v517_v39 }
  0x1c   : > { %s515_s29 = scalar_lea.vmem %s2670_s28, %s1785_s19  ;;  %586 = vmatpush.msra.mxu0 %v564_v15  ;;  %v1913_v30 = vld [vmem:[%s2632_s2] ss:$0 sm:$0xff]  ;;  %s2657_s28 = smov 88  }
  0x1d   : > { %v2196_v0 = vld [vmem:[%s515_s29] sm:$0xff]  ;;  %s2648_s29 = smov 64   ;;  %vm2240_vm6 = vcmp.le.s32.totalorder %v520_v41, %v518_v40  ;;  %s2655_s19 = smov 56  }
  0x1e   : > { %v525_v1 = vsel %vm524_vm0, %v2196_v0, 0.0  ;;  %587 = vmatpush.msra.mxu0 %v563_v16  ;;  %v1914_v33 = vld [vmem:[%s2634_s4] ss:$0 sm:$0xff] }
  0x1f   : > { %526 = vadd.xlane.f32.xlu0 %v525_v1  ;;  %v593_v56 = vld [vmem:[%s2635_s5] sm:$0xff] }
  0x20   : > { %v1931_v3 = vpop.eup %1930  ;;  %588 = vmatpush.msra.mxu0 %v562_v17 }
  0x21   : > { %v529_v4 = vmul.f32 32.0, %v1931_v3  ;;  %vm533_vm1 = vweird.f32 %v1931_v3 }
  0x23   : > { %v530_v5 = vsub.f32 1.0, %v529_v4 }
  0x25   : > { %v531_v6 = vmul.f32 %v1931_v3, %v530_v5 }
  0x27   : > { %v532_v7 = vadd.f32 %v1931_v3, %v531_v6 }
  0x29   : > { %v2200_v8 = vsel %vm533_vm1, %v1931_v3, %v532_v7 }
  0x92   : > { %v527_v9 = vpop.xlane.xlu0 %526 }
  0x93   : > { %v535_v10 = vmul.f32 %v2200_v8, %v527_v9 }
  0x95   : > { %v536_v11 = vsub.f32 %v2196_v0, %v535_v10 }
  0x97   : > { %v537_v12 = vmul.f32 %v536_v11, %v536_v11 }
  0x99   : > { %v538_v13 = vsel %vm524_vm0, %v537_v12, 0.0 }
  0x9a   : > { %539 = vadd.xlane.f32.xlu0 %v538_v13 }
 0x10d   : > { %v540_v18 = vpop.xlane.xlu0 %539 }
 0x10e   : > { %v541_v19 = vmul.f32 %v540_v18, %v2200_v8  ;;  %v594_v18 = vld [vmem:[%s2635_s5 + $0x8] sm:$0xff] }
 0x110   : > { %v542_v20 = vadd.f32 1e-05, %v541_v19 }
 0x112   : > { %1932 = vrsqrt.f32 %v542_v20  ;;  %vm549_vm3 = vweird.f32 %v542_v20 }
 0x118   : > { %v1933_v21 = vpop.eup %1932 }
 0x119   : > { %v544_v22 = vmul.f32 %v1933_v21, %v542_v20  ;;  %vm550_vm2 = vweird.f32 %v1933_v21 }
 0x11a   : > { %vm551_vm4 = vmor %vm549_vm3, %vm550_vm2 }
 0x11b   : > { %v545_v23 = vmul.f32 %v1933_v21, %v544_v22 }
 0x11d   : > { %v546_v24 = vmul.f32 0.5, %v545_v23 }
 0x11f   : > { %v547_v25 = vsub.f32 1.5, %v546_v24 }
 0x121   : > { %v548_v26 = vmul.f32 %v1933_v21, %v547_v25 }
 0x123   : > { %v552_v28 = vsel %vm551_vm4, %v1933_v21, %v548_v26  ;;  %vm1699_vm4 = vcmask 8192  }
 0x124   : > { %v553_v29 = vmul.f32 %v552_v28, %v536_v11 }
 0x126   : > { %v557_v31 = vmul.f32 %v1912_v27, %v553_v29 }
 0x128   : > { %v561_v32 = vadd.f32 %v1913_v30, %v557_v31 }
 0x12a   : > { %1786 = vmatmul.msk.f32.vlgmr.msra.gmra.mxu0 %vm524_vm0, %v561_v32 }
 0x1a7   : > { %v590_v34 = vpop.f32.mrf.mxu0 }
 0x1a8   : > { %v2228_v35 = vadd.f32 %v1914_v33, %v590_v34 }
 0x1aa   : > { %666 = vrot.lane.b32.xlu0 %v2228_v35, %s2657_s28  ;;  %638 = vrot.lane.b32.xlu2 %v2228_v35, %s2648_s29  ;;  %s2651_s29 = smov 104   ;;  %s2678_s28 = smov 112  }
 0x1ab   : > { %598 = vrot.lane.b32.xlu1 %v2228_v35, %s2656_s18  ;;  %s2679_s18 = smov 104  }
 0x204   : > { %v639_v36 = vpop.permute.xlu2 %638 }
 0x205   : > { %659 = vmatpush.msra.mxu3 %v639_v36 }
 0x21c   : > { %v667_v37 = vpop.permute.xlu0 %666 }
 0x21d   : > { %v599_v38 = vpop.permute.xlu1 %598  ;;  %1790 = vmatpush.xpose.msk.msrb.mxu3 %vm600_vm5, %v667_v37 }
 0x21e   : > { %1787 = vmatpush.xpose.msk.msra.mxu1 %vm600_vm5, %v599_v38 }
 0x221   : > { %1788 = vmatmul.msk.f32.vlgmr.msra.gmra.mxu1 %vm600_vm5, %v2228_v35 }
 0x222   : > { %749 = vmatpush.msrb.mxu1 %v594_v18  ;;  %v1917_v18 = vld [vmem:[%s2638_s8] ss:$0 sm:$0xff] }
 0x29e   : > { %v622_v42 = vpop.f32.mrf.mxu1 }
 0x29f   : > { %v625_v44 = vmul.f32 0.35355338, %v622_v42 }
 0x2a1   : > { %v626_v45 = vsel %vm2240_vm6, %v625_v44, -1.7014117e+38 }
 0x2a2   : > { %v627_v46 = vsel %vm600_vm5, %v626_v45, -inf }
 0x2a3   : > { %628 = vmax.xlane.f32.xlu1 %v627_v46 }
 0x2bc   : > { %705 = vrot.lane.b32.xlu1 %v2228_v35, %s2655_s19  ;;  %s2680_s19 = smov 72  }
 0x2c4   : > { %870 = vrot.lane.b32.xlu1 %v2228_v35, %s2650_s23  ;;  %s2653_s23 = smov 40  }
 0x2cc   : > { %777 = vrot.lane.b32.xlu1 %v2228_v35, %s2654_s30  ;;  %s2682_s30 = smov 64  }
 0x316   : > { %v629_v47 = vpop.xlane.xlu1 %628 }
 0x317   : > { %v630_v48 = vsub.f32 %v626_v45, %v629_v47  ;;  %v595_v45 = vld [vmem:[%s2635_s5 + $0x10] sm:$0xff] }
 0x318   : > { %862 = vmatpush.msra.mxu1 %v595_v45 }
 0x319   : > { %v631_v49 = vmul.f32 1.442695, %v630_v48 }
 0x31b   : > { %1934 = vpow2.f32 %v631_v49 }
 0x321   : > { %v1935_v50 = vpop.eup %1934 }
 0x322   : > { %v633_v51 = vsel %vm600_vm5, %v1935_v50, 0.0 }
 0x323   : > { %634 = vadd.xlane.f32.xlu2 %v633_v51 }
 0x32e   : > { %v706_v52 = vpop.permute.xlu1 %705 }
 0x32f   : > { %726 = vmatpush.msrb.mxu0 %v706_v52 }
 0x336   : > { %v871_v58 = vpop.permute.xlu1 %870 }
 0x33b   : > { %664 = vrot.lane.b32.xlu2 %v2228_v35, %s2658_s20  ;;  %s2681_s20 = smov 80  }
 0x33e   : > { %v778_v13 = vpop.permute.xlu1 %777 }
 0x396   : > { %v635_v53 = vpop.xlane.xlu2 %634 }
 0x397   : > { %1936 = vrcp.f32 %v635_v53  ;;  %v1915_v53 = vld [vmem:[%s2636_s6] ss:$0 sm:$0xff] }
 0x39d   : > { %v1937_v54 = vpop.eup %1936 }
 0x39e   : > { %v637_v55 = vmul.f32 %v1937_v54, %v1935_v50  ;;  %v665_v57 = vpop.permute.xlu2 %664 }
 0x3a0   : > { %1789 = vmatmul.msk.f32.vlgmr.msra.gmra.mxu3 %vm600_vm5, %v637_v55 }
 0x3a1   : > { %772 = vmatpush.msra.mxu3 %v593_v56 }
 0x3a8   : > { %1791 = vmatmul.msk.f32.vlgmr.msrb.gmra.mxu3 %vm600_vm5, %v665_v57 }
 0x3a9   : > { %1799 = vmatpush.xpose.msk.msrb.mxu3 %vm600_vm5, %v871_v58 }
 0x423   : > { %v661_v59 = vpop.f32.mrf.mxu3 }
 0x424   : > { %1794 = vmatmul.msk.f32.vlgmr.msra.gmra.mxu3 %vm600_vm5, %v661_v59 }
 0x42b   : > { %v689_v60 = vpop.f32.mrf.mxu3 }
 0x42c   : > { %v692_v61 = vmul.f32 0.35355338, %v689_v60 }
 0x42e   : > { %v693_v62 = vsel %vm2240_vm6, %v692_v61, -1.7014117e+38 }
 0x42f   : > { %v694_v63 = vsel %vm600_vm5, %v693_v62, -inf }
 0x430   : > { %695 = vmax.xlane.f32.xlu0 %v694_v63  ;;  %v998_v63 = vld [vmem:[%s2639_s9 + $0x8] sm:$0xff] }
 0x444   : > { %868 = vrot.lane.b32.xlu0 %v2228_v35, %s2651_s29  ;;  %s2675_s29 = smov 88  }
 0x4a3   : > { %v696_v1 = vpop.xlane.xlu0 %695 }
 0x4a4   : > { %v697_v2 = vsub.f32 %v693_v62, %v696_v1  ;;  %v1000_v62 = vld [vmem:[%s2639_s9 + $0x18] sm:$0xff]  ;;  %v997_v1 = vld [vmem:[%s2639_s9] sm:$0xff] }
 0x4a6   : > { %v698_v3 = vmul.f32 1.442695, %v697_v2  ;;  %v1052_v2 = vld [vmem:[%s2641_s11 + $0x78] sm:$0xff] }
 0x4a7   : > { %v774_v12 = vpop.f32.mrf.mxu3  ;;  %1053 = vmatpush.msra.mxu3 %v1052_v2 }
 0x4a8   : > { %1938 = vpow2.f32 %v698_v3  ;;  %v1051_v3 = vld [vmem:[%s2641_s11 + $0x70] sm:$0xff] }
 0x4a9   : > { %1054 = vmatpush.msra.mxu3 %v1051_v3 }
 0x4ae   : > { %v1939_v4 = vpop.eup %1938 }
 0x4af   : > { %v700_v5 = vsel %vm600_vm5, %v1939_v4, 0.0 }
 0x4b0   : > { %701 = vadd.xlane.f32.xlu2 %v700_v5 }
 0x4b6   : > { %v869_v6 = vpop.permute.xlu0 %868 }
 0x4b7   : > { %1800 = vmatmul.msk.f32.vlgmr.msrb.gmra.mxu3 %vm600_vm5, %v869_v6 }
 0x4c8   : > { %779 = vrot.lane.b32.xlu2 %v2228_v35, %s2649_s26  ;;  %s2652_s26 = smov 48  }
 0x523   : > { %v702_v7 = vpop.xlane.xlu2 %701 }
 0x524   : > { %1940 = vrcp.f32 %v702_v7 }
 0x52a   : > { %v1941_v9 = vpop.eup %1940 }
 0x52b   : > { %v780_v10 = vpop.permute.xlu2 %779  ;;  %v704_v11 = vmul.f32 %v1941_v9, %v1939_v4  ;;  %v1050_v4 = vld [vmem:[%s2641_s11 + $0x68] sm:$0xff] }
 0x52c   : > { %1795 = vmatpush.xpose.msk.msra.mxu0 %vm600_vm5, %v780_v10  ;;  %1055 = vmatpush.msra.mxu3 %v1050_v4 }
 0x52d   : > { %1792 = vmatmul.msk.f32.vlgmr.msrb.gmra.mxu0 %vm600_vm5, %v704_v11 }
 0x535   : > { %1796 = vmatmul.msk.f32.vlgmr.msra.gmra.mxu0 %vm600_vm5, %v778_v13 }
 0x53a   : > { %v893_v14 = vpop.f32.mrf.mxu3 }
 0x53b   : > { %v896_v15 = vmul.f32 0.35355338, %v893_v14 }
 0x53d   : > { %v897_v16 = vsel %vm2240_vm6, %v896_v15, -1.7014117e+38  ;;  %v1916_v15 = vld [vmem:[%s2637_s7] ss:$0 sm:$0xff] }
 0x53e   : > { %v898_v17 = vsel %vm600_vm5, %v897_v16, -inf }
 0x53f   : > { %899 = vmax.xlane.f32.xlu0 %v898_v17 }
 0x553   : > { %818 = vrot.lane.b32.xlu0 %v2228_v35, %s2652_s26  ;;  %s2674_s26 = smov 120  }
 0x5aa   : > { %v728_v19 = vpop.f32.mrf.mxu0 }
 0x5ab   : > { %1793 = vmatmul.msk.f32.vlgmr.msrb.gmra.mxu1 %vm600_vm5, %v728_v19 }
 0x5ac   : > { %1020 = vmatpush.msrb.mxu1 %v1000_v62 }
 0x5b2   : > { %v900_v20 = vpop.xlane.xlu0 %899  ;;  %v802_v21 = vpop.f32.mrf.mxu0 }
 0x5b3   : > { %v901_v22 = vsub.f32 %v897_v16, %v900_v20  ;;  %v805_v23 = vmul.f32 0.35355338, %v802_v21  ;;  %v1049_v21 = vld [vmem:[%s2641_s11 + $0x60] sm:$0xff] }
 0x5b4   : > { %1056 = vmatpush.msra.mxu3 %v1049_v21 }
 0x5b5   : > { %v902_v24 = vmul.f32 1.442695, %v901_v22  ;;  %v806_v25 = vsel %vm2240_vm6, %v805_v23, -1.7014117e+38  ;;  %v1048_v22 = vld [vmem:[%s2641_s11 + $0x58] sm:$0xff]  ;;  %v1047_v23 = vld [vmem:[%s2641_s11 + $0x50] sm:$0xff] }
 0x5b6   : > { %v807_v26 = vsel %vm600_vm5, %v806_v25, -inf  ;;  %1057 = vmatpush.msra.mxu3 %v1048_v22 }
 0x5b7   : > { %1942 = vpow2.f32 %v902_v24  ;;  %808 = vmax.xlane.f32.xlu1 %v807_v26  ;;  %v1046_v24 = vld [vmem:[%s2641_s11 + $0x48] sm:$0xff]  ;;  %v1044_v26 = vld [vmem:[%s2641_s11 + $0x38] sm:$0xff] }
 0x5b8   : > { %1058 = vmatpush.msra.mxu3 %v1047_v23 }
 0x5ba   : > { %1059 = vmatpush.msra.mxu3 %v1046_v24 }
 0x5bd   : > { %v1943_v27 = vpop.eup %1942 }
 0x5be   : > { %v904_v28 = vsel %vm600_vm5, %v1943_v27, 0.0 }
 0x5bf   : > { %905 = vadd.xlane.f32.xlu1 %v904_v28  ;;  %v1042_v28 = vld [vmem:[%s2641_s11 + $0x28] sm:$0xff] }
 0x5c5   : > { %v819_v29 = vpop.permute.xlu0 %818 }
 0x5c6   : > { %839 = vmatpush.msra.mxu2 %v819_v29  ;;  %v1041_v29 = vld [vmem:[%s2641_s11 + $0x20] sm:$0xff] }
 0x5d8   : > { %909 = vrot.lane.b32.xlu1 %v2228_v35, %s2653_s23  ;;  %v596_v35 = vld [vmem:[%s2635_s5 + $0x18] sm:$0xff] }
 0x5d9   : > { %953 = vmatpush.msrb.mxu2 %v596_v35 }
 0x628   : > { %v751_v47 = vpop.f32.mrf.mxu1 }
 0x629   : > { %v775_v48 = vadd.f32 %v774_v12, %v751_v47  ;;  %v1919_v47 = vld [vmem:[%s2642_s12] ss:$0 sm:$0xff] }
 0x62a   : > { %v809_v30 = vpop.xlane.xlu1 %808 }
 0x62b   : > { %v810_v31 = vsub.f32 %v806_v25, %v809_v30  ;;  %v1045_v25 = vld [vmem:[%s2641_s11 + $0x40] sm:$0xff]  ;;  %v1040_v30 = vld [vmem:[%s2641_s11 + $0x18] sm:$0xff] }
 0x62c   : > { %1060 = vmatpush.msra.mxu3 %v1045_v25 }
 0x62d   : > { %v811_v32 = vmul.f32 1.442695, %v810_v31  ;;  %v1039_v31 = vld [vmem:[%s2641_s11 + $0x10] sm:$0xff] }
 0x62e   : > { %1061 = vmatpush.msra.mxu3 %v1044_v26 }
 0x62f   : > { %1944 = vpow2.f32 %v811_v32  ;;  %v1038_v32 = vld [vmem:[%s2641_s11 + $0x8] sm:$0xff] }
 0x632   : > { %v906_v36 = vpop.xlane.xlu1 %905 }
 0x633   : > { %1946 = vrcp.f32 %v906_v36 }
 0x635   : > { %v1945_v33 = vpop.eup %1944 }
 0x636   : > { %v813_v34 = vsel %vm600_vm5, %v1945_v33, 0.0 }
 0x637   : > { %814 = vadd.xlane.f32.xlu2 %v813_v34  ;;  %v1918_v34 = vld [vmem:[%s2640_s10] ss:$0 sm:$0xff] }
 0x639   : > { %v1947_v37 = vpop.eup %1946 }
 0x63a   : > { %v908_v38 = vmul.f32 %v1947_v37, %v1943_v27  ;;  %v1043_v27 = vld [vmem:[%s2641_s11 + $0x30] sm:$0xff] }
 0x63b   : > { %1062 = vmatpush.msra.mxu3 %v1043_v27 }
 0x63d   : > { %1063 = vmatpush.msra.mxu3 %v1042_v28 }
 0x63f   : > { %1064 = vmatpush.msra.mxu3 %v1041_v29 }
 0x641   : > { %1065 = vmatpush.msra.mxu3 %v1040_v30 }
 0x643   : > { %1066 = vmatpush.msra.mxu3 %v1039_v31 }
 0x645   : > { %1067 = vmatpush.msra.mxu3 %v1038_v32 }
 0x64a   : > { %v910_v39 = vpop.permute.xlu1 %909 }
 0x64b   : > { %930 = vmatpush.msrb.mxu0 %v910_v39 }
 0x64c   : > { %1801 = vmatmul.msk.f32.vlgmr.msrb.gmra.mxu0 %vm600_vm5, %v908_v38 }
 0x6aa   : > { %v815_v40 = vpop.xlane.xlu2 %814 }
 0x6ab   : > { %1948 = vrcp.f32 %v815_v40 }
 0x6b1   : > { %v1949_v41 = vpop.eup %1948 }
 0x6b2   : > { %v817_v42 = vmul.f32 %v1949_v41, %v1945_v33  ;;  %v1037_v33 = vld [vmem:[%s2641_s11] sm:$0xff] }
 0x6b3   : > { %1068 = vmatpush.msra.mxu3 %v1037_v33 }
 0x6b4   : > { %1797 = vmatmul.msk.f32.vlgmr.msra.gmra.mxu2 %vm600_vm5, %v817_v42 }
 0x6c9   : > { %v932_v44 = vpop.f32.mrf.mxu0 }
 0x6ca   : > { %1802 = vmatmul.msk.f32.vlgmr.msrb.gmra.mxu2 %vm600_vm5, %v932_v44 }
 0x737   : > { %v841_v46 = vpop.f32.mrf.mxu2 }
 0x738   : > { %1798 = vmatmul.msk.f32.vlgmr.msra.gmra.mxu1 %vm600_vm5, %v841_v46 }
 0x74d   : > { %v955_v51 = vpop.f32.mrf.mxu2 }
 0x7b5   : > { %v864_v49 = vpop.f32.mrf.mxu1 }
 0x7b6   : > { %v867_v50 = vadd.f32 %v864_v49, %v775_v48 }
 0x7b8   : > { %v958_v52 = vadd.f32 %v955_v51, %v867_v50 }
 0x7ba   : > { %v959_v54 = vadd.f32 %v958_v52, %v2196_v0  ;;  %v999_v0 = vld [vmem:[%s2639_s9 + $0x10] sm:$0xff] }
 0x7bb   : > { %1021 = vmatpush.msrb.mxu1 %v999_v0 }
 0x7bc   : > { %v2305_v55 = vadd.f32 %v1915_v53, %v959_v54 }
 0x7bd   : > { %1022 = vmatpush.msrb.mxu1 %v998_v63 }
 0x7be   : > { %v967_v56 = vsel %vm524_vm0, %v2305_v55, 0.0 }
 0x7bf   : > { %968 = vadd.xlane.f32.xlu2 %v967_v56  ;;  %1023 = vmatpush.msrb.mxu1 %v997_v1 }
 0x832   : > { %v969_v57 = vpop.xlane.xlu2 %968 }
 0x833   : > { %v970_v58 = vmul.f32 %v969_v57, %v2200_v8 }
 0x835   : > { %v971_v59 = vsub.f32 %v2305_v55, %v970_v58  ;;  %v1809_v58 = vld [vmem:[%s2633_s3 + $0x38] sm:$0xff] }
 0x836   : > { %1138 = vmatpush.msra.mxu0 %v1809_v58 }
 0x837   : > { %v972_v60 = vmul.f32 %v971_v59, %v971_v59 }
 0x839   : > { %v973_v61 = vsel %vm524_vm0, %v972_v60, 0.0  ;;  %v1806_v60 = vld [vmem:[%s2633_s3 + $0x20] sm:$0xff] }
 0x83a   : > { %974 = vadd.xlane.f32.xlu2 %v973_v61 }
 0x8ad   : > { %v975_v5 = vpop.xlane.xlu2 %974 }
 0x8ae   : > { %v976_v6 = vmul.f32 %v975_v5, %v2200_v8 }
 0x8b0   : > { %v977_v7 = vadd.f32 1e-05, %v976_v6  ;;  %v1920_v6 = vld [vmem:[%s2671_s1 + $0x1] ss:$0 sm:$0xff] }
 0x8b2   : > { %1950 = vrsqrt.f32 %v977_v7  ;;  %vm984_vm8 = vweird.f32 %v977_v7 }
 0x8b8   : > { %v1951_v9 = vpop.eup %1950 }
 0x8b9   : > { %v979_v10 = vmul.f32 %v1951_v9, %v977_v7  ;;  %vm985_vm7 = vweird.f32 %v1951_v9 }
 0x8ba   : > { %vm986_vm9 = vmor %vm984_vm8, %vm985_vm7 }
 0x8bb   : > { %v980_v11 = vmul.f32 %v1951_v9, %v979_v10  ;;  %v1921_v10 = vld [vmem:[%s2632_s2 + $0x1] ss:$0 sm:$0xff] }
 0x8bd   : > { %v981_v12 = vmul.f32 0.5, %v980_v11 }
 0x8bf   : > { %v982_v13 = vsub.f32 1.5, %v981_v12 }
 0x8c1   : > { %v983_v14 = vmul.f32 %v1951_v9, %v982_v13  ;;  %v1922_v13 = vld [vmem:[%s2634_s4 + $0x1] ss:$0 sm:$0xff] }
 0x8c3   : > { %v987_v16 = vsel %vm986_vm9, %v1951_v9, %v983_v14 }
 0x8c4   : > { %v988_v17 = vmul.f32 %v987_v16, %v971_v59  ;;  %v1807_v59 = vld [vmem:[%s2633_s3 + $0x28] sm:$0xff] }
 0x8c6   : > { %v992_v19 = vmul.f32 %v1916_v15, %v988_v17 }
 0x8c8   : > { %v996_v20 = vadd.f32 %v1917_v18, %v992_v19 }
 0x8ca   : > { %1803 = vmatmul.msk.f32.vlgmr.msrb.gmra.mxu1 %vm524_vm0, %v996_v20 }
 0x947   : > { %v1025_v36 = vpop.f32.mrf.mxu1 }
 0x948   : > { %v1026_v37 = vadd.f32 %v1918_v34, %v1025_v36 }
 0x94a   : > { %v1028_v38 = vmul.f32 %v1026_v37, %v1026_v37 }
 0x94c   : > { %v1029_v39 = vmul.f32 %v1028_v38, %v1026_v37 }
 0x94e   : > { %v1030_v35 = vmul.f32 0.044715, %v1029_v39 }
 0x950   : > { %v1031_v40 = vadd.f32 %v1030_v35, %v1026_v37 }
 0x952   : > { %v1032_v41 = vmul.f32 0.7978846, %v1031_v40 }
 0x954   : > { %1952 = vtanh.f32 %v1032_v41 }
 0x95a   : > { %v1953_v42 = vpop.eup %1952 }
 0x95b   : > { %v1034_v44 = vadd.f32 1.0, %v1953_v42 }
 0x95d   : > { %v1035_v45 = vmul.f32 0.5, %v1034_v44 }
 0x95f   : > { %v1036_v46 = vmul.f32 %v1035_v45, %v1026_v37 }
 0x961   : > { %1069 = vmatmul.f32.vlgmr.msra.gmra.mxu3 %v1036_v46 }
 0x9e4   : > { %v1070_v48 = vpop.f32.mrf.mxu3 }
 0x9e5   : > { %v1073_v49 = vadd.f32 %v1070_v48, %v2305_v55  ;;  %v1808_v55 = vld [vmem:[%s2633_s3 + $0x30] sm:$0xff] }
 0x9e6   : > { %1139 = vmatpush.msra.mxu0 %v1808_v55 }
 0x9e7   : > { %v2387_v50 = vadd.f32 %v1919_v47, %v1073_v49 }
 0x9e8   : > { %1140 = vmatpush.msra.mxu0 %v1807_v59 }
 0x9e9   : > { %v1083_v51 = vsel %vm524_vm0, %v2387_v50, 0.0 }
 0x9ea   : > { %1084 = vadd.xlane.f32.xlu0 %v1083_v51  ;;  %1141 = vmatpush.msra.mxu0 %v1806_v60 }
 0xa5d   : > { %v1085_v52 = vpop.xlane.xlu0 %1084 }
 0xa5e   : > { %v1086_v53 = vmul.f32 %v1085_v52, %v2200_v8 }
 0xa60   : > { %v1087_v54 = vsub.f32 %v2387_v50, %v1086_v53 }
 0xa62   : > { %v1088_v56 = vmul.f32 %v1087_v54, %v1087_v54 }
 0xa64   : > { %v1089_v57 = vsel %vm524_vm0, %v1088_v56, 0.0 }
 0xa65   : > { %1090 = vadd.xlane.f32.xlu2 %v1089_v57 }
 0xad8   : > { %v1091_v61 = vpop.xlane.xlu2 %1090 }
 0xad9   : > { %v1092_v62 = vmul.f32 %v1091_v61, %v2200_v8 }
 0xadb   : > { %v1093_v0 = vadd.f32 1e-05, %v1092_v62 }
 0xadd   : > { %1954 = vrsqrt.f32 %v1093_v0  ;;  %vm1100_vm11 = vweird.f32 %v1093_v0 }
 0xae3   : > { %v1955_v63 = vpop.eup %1954 }
 0xae4   : > { %v1095_v1 = vmul.f32 %v1955_v63, %v1093_v0  ;;  %vm1101_vm10 = vweird.f32 %v1955_v63 }
 0xae5   : > { %vm1102_vm12 = vmor %vm1100_vm11, %vm1101_vm10 }
 0xae6   : > { %v1096_v2 = vmul.f32 %v1955_v63, %v1095_v1 }
 0xae8   : > { %v1097_v3 = vmul.f32 0.5, %v1096_v2 }
 0xaea   : > { %v1098_v4 = vsub.f32 1.5, %v1097_v3 }
 0xaec   : > { %v1099_v5 = vmul.f32 %v1955_v63, %v1098_v4  ;;  %v1813_v4 = vld [vmem:[%s2635_s5 + $0x28] sm:$0xff] }
 0xaee   : > { %v1103_v7 = vsel %vm1102_vm12, %v1955_v63, %v1099_v5 }
 0xaef   : > { %v1104_v9 = vmul.f32 %v1103_v7, %v1087_v54 }
 0xaf1   : > { %v1108_v11 = vmul.f32 %v1920_v6, %v1104_v9  ;;  %v1812_v6 = vld [vmem:[%s2635_s5 + $0x20] sm:$0xff] }
 0xaf3   : > { %v1112_v12 = vadd.f32 %v1921_v10, %v1108_v11 }
 0xaf5   : > { %1811 = vmatmul.msk.f32.vlgmr.msra.gmra.mxu0 %vm524_vm0, %v1112_v12 }
 0xb72   : > { %v1143_v14 = vpop.f32.mrf.mxu0 }
 0xb73   : > { %v2417_v15 = vadd.f32 %v1922_v13, %v1143_v14 }
 0xb75   : > { %1217 = vrot.lane.b32.xlu2 %v2417_v15, %s2674_s26  ;;  %1219 = vrot.lane.b32.xlu1 %v2417_v15, %s2675_s29  ;;  %s2683_s29 = smov 48  }
 0xb7d   : > { %1152 = vrot.lane.b32.xlu2 %v2417_v15, %s2676_s27  ;;  %s2684_s27 = smov 40  }
 0xb85   : > { %1258 = vrot.lane.b32.xlu2 %v2417_v15, %s2677_s17  ;;  %s2002_s17 = scalar_lea.hbm %s2646_s16, 2 }
 0xb8d   : > { %1330 = vrot.lane.b32.xlu2 %v2417_v15, %s2678_s28  ;;  %s1722_s28 = scalar_lea.hbm %s2646_s16, %s2164_s25 }
 0xb95   : > { %1421 = vrot.lane.b32.xlu2 %v2417_v15, %s2679_s18 }
 0xbcf   : > { %v1218_v16 = vpop.permute.xlu2 %1217 }
 0xbd7   : > { %v1153_v17 = vpop.permute.xlu2 %1152 }
 0xbd8   : > { %1816 = vmatpush.xpose.msk.msra.mxu2 %vm600_vm5, %v1153_v17  ;;  %v1814_v17 = vld [vmem:[%s2635_s5 + $0x30] sm:$0xff] }
 0xbdb   : > { %1817 = vmatmul.msk.f32.vlgmr.msra.gmra.mxu2 %vm600_vm5, %v2417_v15 }
 0xbdf   : > { %v1259_v18 = vpop.permute.xlu2 %1258 }
 0xbe0   : > { %1279 = vmatpush.msrb.mxu2 %v1259_v18 }
 0xbe7   : > { %v1220_v19 = vpop.permute.xlu1 %1219  ;;  %v1331_v28 = vpop.permute.xlu2 %1330 }
 0xbe8   : > { %1819 = vmatpush.xpose.msk.msrb.mxu0 %vm600_vm5, %v1220_v19  ;;  %v1815_v19 = vld [vmem:[%s2635_s5 + $0x38] sm:$0xff] }
 0xbe9   : > { %1506 = vmatpush.msrb.mxu3 %v1815_v19 }
 0xbeb   : > { %1820 = vmatmul.msk.f32.vlgmr.msrb.gmra.mxu0 %vm600_vm5, %v1218_v16 }
 0xbec   : > { %1325 = vmatpush.msra.mxu0 %v1812_v6  ;;  %v1842_v6 = vld [vmem:[%s2641_s11 + $0x88] sm:$0xff] }
 0xbee   : > { %1415 = vmatpush.msrb.mxu0 %v1814_v17 }
 0xbef   : > { %v1422_v29 = vpop.permute.xlu2 %1421 }
 0xc5e   : > { %v1175_v20 = vpop.f32.mrf.mxu2 }
 0xc5f   : > { %v1178_v21 = vmul.f32 0.35355338, %v1175_v20 }
 0xc61   : > { %v1179_v22 = vsel %vm2240_vm6, %v1178_v21, -1.7014117e+38 }
 0xc62   : > { %v1180_v23 = vsel %vm600_vm5, %v1179_v22, -inf }
 0xc63   : > { %1181 = vmax.xlane.f32.xlu2 %v1180_v23 }
 0xc68   : > { %v1242_v24 = vpop.f32.mrf.mxu0 }
 0xc69   : > { %v1245_v25 = vmul.f32 0.35355338, %v1242_v24 }
 0xc6b   : > { %v1246_v26 = vsel %vm2240_vm6, %v1245_v25, -1.7014117e+38 }
 0xc6c   : > { %v1247_v27 = vsel %vm600_vm5, %v1246_v26, -inf }
 0xc6d   : > { %1248 = vmax.xlane.f32.xlu1 %v1247_v27 }
 0xc86   : > { %1423 = vrot.lane.b32.xlu1 %v2417_v15, %s2680_s19 }
 0xcd6   : > { %v1182_v30 = vpop.xlane.xlu2 %1181 }
 0xcd7   : > { %v1183_v31 = vsub.f32 %v1179_v22, %v1182_v30 }
 0xcd9   : > { %v1184_v32 = vmul.f32 1.442695, %v1183_v31 }
 0xcdb   : > { %1956 = vpow2.f32 %v1184_v32 }
 0xce0   : > { %v1249_v33 = vpop.xlane.xlu1 %1248 }
 0xce1   : > { %v1957_v34 = vpop.eup %1956  ;;  %v1250_v36 = vsub.f32 %v1246_v26, %v1249_v33 }
 0xce2   : > { %v1186_v37 = vsel %vm600_vm5, %v1957_v34, 0.0 }
 0xce3   : > { %v1251_v38 = vmul.f32 1.442695, %v1250_v36  ;;  %1187 = vadd.xlane.f32.xlu2 %v1186_v37 }
 0xce5   : > { %1958 = vpow2.f32 %v1251_v38  ;;  %v1838_v38 = vld [vmem:[%s2639_s9 + $0x38] sm:$0xff] }
 0xceb   : > { %v1959_v39 = vpop.eup %1958 }
 0xcec   : > { %v1253_v35 = vsel %vm600_vm5, %v1959_v39, 0.0 }
 0xced   : > { %1254 = vadd.xlane.f32.xlu0 %v1253_v35  ;;  %v1835_v35 = vld [vmem:[%s2639_s9 + $0x20] sm:$0xff] }
 0xcf8   : > { %v1424_v45 = vpop.permute.xlu1 %1423 }
 0xd01   : > { %1332 = vrot.lane.b32.xlu0 %v2417_v15, %s2681_s20  ;;  %s1726_s20 = sshll.u32 %s1722_s28, 4  ;;  %s1727_s20 = int_to_ptr.hbm [resolvable:$true] %s1726_s20 }
 0xd02   : > { %s1996_s23 = sshra.s32 %s1727_s20, 4  ;;  %s1997_s23 = int_to_ptr.hbm [resolvable:$true] %s1996_s23 }
 0xd03   : > { %s1998_s26 = scalar_lea.hbm %s1997_s23, 1  ;;  %p2003_p0 = scmp.lt.s32.totalorder %s1997_s23, %s2646_s16 }
 0xd04   : > { %p1999_p11 = scmp.ne.s32.totalorder %s1997_s23, %s1998_s26  ;;  %p2004_p1 = scmp.lt.s32.totalorder %s2002_s17, %s1998_s26 }
 0xd06   : > { %p2000_p12 = pnand %p1999_p11, %p2181_p5  ;;  %p2005_p2 = por %p2004_p1, %p2003_p0 }
 0xd08   : > { %p2001_p13 = pneg %p2000_p12 }
 0xd0a   : > { %p2006_p3 = pnand %p2005_p2, %p2001_p13 }
 0xd56   : > { %v1188_v59 = vpop.xlane.xlu2 %1187 }
 0xd60   : > { %v1255_v40 = vpop.xlane.xlu0 %1254 }
 0xd61   : > { %1960 = vrcp.f32 %v1255_v40  ;;  %v1856_v40 = vld [vmem:[%s2641_s11 + $0xf8] sm:$0xff] }
 0xd67   : > { %v1961_v41 = vpop.eup %1960 }
 0xd68   : > { %v1257_v42 = vmul.f32 %v1961_v41, %v1959_v39  ;;  %v1836_v39 = vld [vmem:[%s2639_s9 + $0x28] sm:$0xff]  ;;  %v1855_v41 = vld [vmem:[%s2641_s11 + $0xf0] sm:$0xff] }
 0xd6a   : > { %1821 = vmatmul.msk.f32.vlgmr.msrb.gmra.mxu2 %vm600_vm5, %v1257_v42  ;;  %v1854_v42 = vld [vmem:[%s2641_s11 + $0xe8] sm:$0xff] }
 0xd73   : > { %v1333_v44 = vpop.permute.xlu0 %1332 }
 0xd74   : > { %1824 = vmatpush.xpose.msk.msra.mxu2 %vm600_vm5, %v1333_v44 }
 0xd77   : > { %1825 = vmatmul.msk.f32.vlgmr.msra.gmra.mxu2 %vm600_vm5, %v1331_v28  ;;  %v1923_v28 = vld [vmem:[%s2636_s6 + $0x1] ss:$0 sm:$0xff] }
 0xd78   : > { %1828 = vmatpush.xpose.msk.msrb.mxu2 %vm600_vm5, %v1424_v45 }
 0xd7c   : > { %1612 = vmatpush.msra.mxu2 %v1856_v40 }
 0xd7e   : > { %1613 = vmatpush.msra.mxu2 %v1855_v41 }
 0xd7f   : > { %1829 = vmatmul.msk.f32.vlgmr.msrb.gmra.mxu2 %vm600_vm5, %v1422_v29 }
 0xd80   : > { %1614 = vmatpush.msra.mxu2 %v1854_v42 }
 0xded   : > { %v1281_v46 = vpop.f32.mrf.mxu2 }
 0xdfa   : > { %v1355_v47 = vpop.f32.mrf.mxu2 }
 0xdfb   : > { %v1358_v48 = vmul.f32 0.35355338, %v1355_v47 }
 0xdfd   : > { %v1359_v49 = vsel %vm2240_vm6, %v1358_v48, -1.7014117e+38 }
 0xdfe   : > { %v1360_v51 = vsel %vm600_vm5, %v1359_v49, -inf }
 0xdff   : > { %1361 = vmax.xlane.f32.xlu0 %v1360_v51 }
 0xe02   : > { %v1446_v52 = vpop.f32.mrf.mxu2 }
 0xe03   : > { %v1449_v53 = vmul.f32 0.35355338, %v1446_v52 }
 0xe05   : > { %v1450_v54 = vsel %vm2240_vm6, %v1449_v53, -1.7014117e+38 }
 0xe06   : > { %v1451_v56 = vsel %vm600_vm5, %v1450_v54, -inf }
 0xe07   : > { %1452 = vmax.xlane.f32.xlu1 %v1451_v56 }
 0xe13   : > { %1191 = vrot.lane.b32.xlu0 %v2417_v15, %s2682_s30 }
 0xe72   : > { %v1362_v57 = vpop.xlane.xlu0 %1361 }
 0xe73   : > { %v1363_v58 = vsub.f32 %v1359_v49, %v1362_v57 }
 0xe75   : > { %v1364_v55 = vmul.f32 1.442695, %v1363_v58  ;;  %v1925_v58 = vld [vmem:[%s2638_s8 + $0x1] ss:$0 sm:$0xff] }
 0xe77   : > { %1962 = vpow2.f32 %v1364_v55 }
 0xe78   : > { %1964 = vrcp.f32 %v1188_v59 }
 0xe7a   : > { %v1453_v60 = vpop.xlane.xlu1 %1452 }
 0xe7b   : > { %v1454_v61 = vsub.f32 %v1450_v54, %v1453_v60  ;;  %v1924_v54 = vld [vmem:[%s2637_s7 + $0x1] ss:$0 sm:$0xff] }
 0xe7c   : > { %v1853_v60 = vld [vmem:[%s2641_s11 + $0xe0] sm:$0xff] }
 0xe7d   : > { %v1963_v62 = vpop.eup %1962  ;;  %v1455_v0 = vmul.f32 1.442695, %v1454_v61  ;;  %1615 = vmatpush.msra.mxu2 %v1853_v60  ;;  %v1852_v61 = vld [vmem:[%s2641_s11 + $0xd8] sm:$0xff] }
 0xe7e   : > { %v1366_v63 = vsel %vm600_vm5, %v1963_v62, 0.0  ;;  %v1965_v43 = vpop.eup %1964 }
 0xe7f   : > { %1966 = vpow2.f32 %v1455_v0  ;;  %1367 = vadd.xlane.f32.xlu2 %v1366_v63  ;;  %v1190_v2 = vmul.f32 %v1965_v43, %v1957_v34  ;;  %1616 = vmatpush.msra.mxu2 %v1852_v61  ;;  %v1850_v0 = vld [vmem:[%s2641_s11 + $0xc8] sm:$0xff]  ;;  %v1849_v63 = vld [vmem:[%s2641_s11 + $0xc0] sm:$0xff]  ;;  %v1848_v43 = vld [vmem:[%s2641_s11 + $0xb8] sm:$0xff] }
 0xe85   : > { %v1967_v1 = vpop.eup %1966  ;;  %v1192_v3 = vpop.permute.xlu0 %1191 }
 0xe86   : > { %1212 = vmatpush.msra.mxu1 %v1192_v3  ;;  %v1457_v5 = vsel %vm600_vm5, %v1967_v1, 0.0  ;;  %v1845_v3 = vld [vmem:[%s2641_s11 + $0xa0] sm:$0xff] }
 0xe87   : > { %1818 = vmatmul.msk.f32.vlgmr.msra.gmra.mxu1 %vm600_vm5, %v1190_v2  ;;  %1458 = vadd.xlane.f32.xlu1 %v1457_v5  ;;  %v1846_v2 = vld [vmem:[%s2641_s11 + $0xa8] sm:$0xff]  ;;  %v1843_v5 = vld [vmem:[%s2641_s11 + $0x90] sm:$0xff] }
 0xe88   : > { %1302 = vmatpush.msrb.mxu1 %v1813_v4  ;;  %v1844_v4 = vld [vmem:[%s2641_s11 + $0x98] sm:$0xff] }
 0xe8f   : > { %1822 = vmatmul.msk.f32.vlgmr.msrb.gmra.mxu1 %vm600_vm5, %v1281_v46 }
 0xe97   : > { %1371 = vrot.lane.b32.xlu2 %v2417_v15, %s2683_s29  ;;  %s510_s29 = sand.u32 1, %s2036_s22  }
 0xe98   : > { %s511_s18 = scalar_lea.vmem [#allocation2], %s510_s29  ;;  %s1714_s30 = scalar_lea.sflag [#allocation3], %s510_s29 }
 0xe99   : > { %s1724_s19 = sshll.u32 %s511_s18, 4  ;;  %s1725_s19 = int_to_ptr.vmem [resolvable:$true] %s1724_s19 }
 0xea0   : > { %1462 = vrot.lane.b32.xlu1 %v2417_v15, %s2684_s27 }
 0xef2   : > { %v1368_v7 = vpop.xlane.xlu2 %1367 }
 0xef3   : > { %1968 = vrcp.f32 %v1368_v7  ;;  %v1841_v7 = vld [vmem:[%s2641_s11 + $0x80] sm:$0xff] }
 0xef9   : > { %v1969_v9 = vpop.eup %1968 }
 0xefa   : > { %v1370_v10 = vmul.f32 %v1969_v9, %v1963_v62  ;;  %v1372_v11 = vpop.permute.xlu2 %1371  ;;  %v1459_v13 = vpop.xlane.xlu1 %1458  ;;  %v1851_v62 = vld [vmem:[%s2641_s11 + $0xd0] sm:$0xff]  ;;  %v1926_v9 = vld [vmem:[%s2640_s10 + $0x1] ss:$0 sm:$0xff] }
 0xefb   : > { %1392 = vmatpush.msra.mxu1 %v1372_v11  ;;  %1970 = vrcp.f32 %v1459_v13  ;;  %1617 = vmatpush.msra.mxu2 %v1851_v62 }
 0xefc   : > { %1826 = vmatmul.msk.f32.vlgmr.msra.gmra.mxu1 %vm600_vm5, %v1370_v10 }
 0xefd   : > { %1618 = vmatpush.msra.mxu2 %v1850_v0 }
 0xeff   : > { %1619 = vmatpush.msra.mxu2 %v1849_v63 }
 0xf01   : > { %v1971_v14 = vpop.eup %1970  ;;  %1620 = vmatpush.msra.mxu2 %v1848_v43 }
 0xf02   : > { %v1461_v15 = vmul.f32 %v1971_v14, %v1967_v1  ;;  %v1847_v1 = vld [vmem:[%s2641_s11 + $0xb0] sm:$0xff] }
 0xf03   : > { %1621 = vmatpush.msra.mxu2 %v1847_v1 }
 0xf04   : > { %v1214_v12 = vpop.f32.mrf.mxu1 }
 0xf05   : > { %1823 = vmatmul.msk.f32.vlgmr.msra.gmra.mxu0 %vm600_vm5, %v1214_v12  ;;  %1622 = vmatpush.msra.mxu2 %v1846_v2 }
 0xf06   : > { %1578 = vmatpush.msra.mxu0 %v1838_v38 }
 0xf07   : > { %1623 = vmatpush.msra.mxu2 %v1845_v3 }
 0xf09   : > { %1624 = vmatpush.msra.mxu2 %v1844_v4 }
 0xf0b   : > { %1625 = vmatpush.msra.mxu2 %v1843_v5 }
 0xf0c   : > { %v1304_v18 = vpop.f32.mrf.mxu1 }
 0xf0d   : > { %1626 = vmatpush.msra.mxu2 %v1842_v6 }
 0xf0f   : > { %1627 = vmatpush.msra.mxu2 %v1841_v7 }
 0xf12   : > { %v1463_v16 = vpop.permute.xlu1 %1462 }
 0xf13   : > { %1483 = vmatpush.msrb.mxu1 %v1463_v16 }
 0xf14   : > { %1830 = vmatmul.msk.f32.vlgmr.msrb.gmra.mxu1 %vm600_vm5, %v1461_v15 }
 0xf79   : > { %v1394_v20 = vpop.f32.mrf.mxu1 }
 0xf7a   : > { %1827 = vmatmul.msk.f32.vlgmr.msrb.gmra.mxu0 %vm600_vm5, %v1394_v20 }
 0xf82   : > { %v1327_v22 = vpop.f32.mrf.mxu0 }
 0xf83   : > { %v1328_v24 = vadd.f32 %v1327_v22, %v1304_v18 }
 0xf91   : > { %v1485_v21 = vpop.f32.mrf.mxu1 }
 0xf92   : > { %1831 = vmatmul.msk.f32.vlgmr.msrb.gmra.mxu3 %vm600_vm5, %v1485_v21  ;;  %v1927_v21 = vld [vmem:[%s2642_s12 + $0x1] ss:$0 sm:$0xff] }
 0xff7   : > { %v1417_v23 = vpop.f32.mrf.mxu0 }
 0xff8   : > { %v1420_v25 = vadd.f32 %v1417_v23, %v1328_v24 }
0x1015   : > { %v1508_v26 = vpop.f32.mrf.mxu3 }
0x1016   : > { %v1511_v27 = vadd.f32 %v1508_v26, %v1420_v25 }
0x1018   : > { %v1512_v29 = vadd.f32 %v1511_v27, %v2387_v50  ;;  %v1837_v50 = vld [vmem:[%s2639_s9 + $0x30] sm:$0xff] }
0x1019   : > { %1579 = vmatpush.msra.mxu0 %v1837_v50 }
0x101a   : > { %v2490_v30 = vadd.f32 %v1923_v28, %v1512_v29 }
0x101b   : > { %1580 = vmatpush.msra.mxu0 %v1836_v39 }
0x101c   : > { %v1523_v31 = vsel %vm524_vm0, %v2490_v30, 0.0 }
0x101d   : > { %1524 = vadd.xlane.f32.xlu0 %v1523_v31  ;;  %1581 = vmatpush.msra.mxu0 %v1835_v35 }
0x1090   : > { %v1525_v32 = vpop.xlane.xlu0 %1524 }
0x1091   : > { %v1526_v33 = vmul.f32 %v1525_v32, %v2200_v8  ;;  %v1674_v32 = vld [vmem:[%s2645_s15 + $0x18] sm:$0xff] }
0x1092   : > { %1691 = vmatpush.msra.mxu1 %v1674_v32 }
0x1093   : > { %v1527_v34 = vsub.f32 %v2490_v30, %v1526_v33  ;;  %v1672_v33 = vld [vmem:[%s2645_s15 + $0x8] sm:$0xff] }
0x1095   : > { %v1528_v36 = vmul.f32 %v1527_v34, %v1527_v34 }
0x1097   : > { %v1529_v37 = vsel %vm524_vm0, %v1528_v36, 0.0 }
0x1098   : > { %1530 = vadd.xlane.f32.xlu2 %v1529_v37 }
0x110b   : > { %v1531_v44 = vpop.xlane.xlu2 %1530 }
0x110c   : > { %v1532_v45 = vmul.f32 %v1531_v44, %v2200_v8  ;;  %v1928_v44 = vld [vmem:[%s2643_s13] ss:$0 sm:$0xff] }
0x110e   : > { %v1533_v46 = vadd.f32 1e-05, %v1532_v45 }
0x1110   : > { %1972 = vrsqrt.f32 %v1533_v46  ;;  %vm1540_vm14 = vweird.f32 %v1533_v46 }
0x1116   : > { %v1973_v47 = vpop.eup %1972 }
0x1117   : > { %v1535_v48 = vmul.f32 %v1973_v47, %v1533_v46  ;;  %vm1541_vm13 = vweird.f32 %v1973_v47 }
0x1118   : > { %vm1542_vm15 = vmor %vm1540_vm14, %vm1541_vm13 }
0x1119   : > { %v1536_v49 = vmul.f32 %v1973_v47, %v1535_v48 }
0x111b   : > { %v1537_v51 = vmul.f32 0.5, %v1536_v49 }
0x111d   : > { %v1538_v52 = vsub.f32 1.5, %v1537_v51 }
0x111f   : > { %v1539_v53 = vmul.f32 %v1973_v47, %v1538_v52 }
0x1121   : > { %v1543_v56 = vsel %vm1542_vm15, %v1973_v47, %v1539_v53 }
0x1122   : > { %v1544_v57 = vmul.f32 %v1543_v56, %v1527_v34  ;;  %v1671_v34 = vld [vmem:[%s2645_s15] sm:$0xff] }
0x1124   : > { %v1548_v55 = vmul.f32 %v1924_v54, %v1544_v57 }
0x1126   : > { %v1552_v59 = vadd.f32 %v1925_v58, %v1548_v55 }
0x1128   : > { %1840 = vmatmul.msk.f32.vlgmr.msra.gmra.mxu0 %vm524_vm0, %v1552_v59 }
0x11a5   : > { %v1583_v10 = vpop.f32.mrf.mxu0 }
0x11a6   : > { %v1584_v11 = vadd.f32 %v1926_v9, %v1583_v10 }
0x11a8   : > { %v1586_v12 = vmul.f32 %v1584_v11, %v1584_v11 }
0x11aa   : > { %v1587_v13 = vmul.f32 %v1586_v12, %v1584_v11 }
0x11ac   : > { %v1588_v14 = vmul.f32 0.044715, %v1587_v13 }
0x11ae   : > { %v1589_v15 = vadd.f32 %v1588_v14, %v1584_v11 }
0x11b0   : > { %v1590_v16 = vmul.f32 0.7978846, %v1589_v15 }
0x11b2   : > { %1974 = vtanh.f32 %v1590_v16 }
0x11b8   : > { %v1975_v17 = vpop.eup %1974 }
0x11b9   : > { %v1592_v18 = vadd.f32 1.0, %v1975_v17 }
0x11bb   : > { %v1593_v19 = vmul.f32 0.5, %v1592_v18 }
0x11bd   : > { %v1594_v20 = vmul.f32 %v1593_v19, %v1584_v11 }
0x11bf   : > { %1628 = vmatmul.f32.vlgmr.msra.gmra.mxu2 %v1594_v20 }
0x1242   : > { %v1629_v22 = vpop.f32.mrf.mxu2 }
0x1243   : > { %v1632_v23 = vadd.f32 %v1629_v22, %v2490_v30  ;;  %v1673_v30 = vld [vmem:[%s2645_s15 + $0x10] sm:$0xff] }
0x1244   : > { %1692 = vmatpush.msra.mxu1 %v1673_v30 }
0x1245   : > { %v1638_v24 = vadd.f32 %v1927_v21, %v1632_v23 }
0x1246   : > { %1693 = vmatpush.msra.mxu1 %v1672_v33 }
0x1247   : > { %v1641_v25 = vsel %vm524_vm0, %v1638_v24, 0.0 }
0x1248   : > { %1642 = vadd.xlane.f32.xlu1 %v1641_v25  ;;  %1694 = vmatpush.msra.mxu1 %v1671_v34 }
0x12bb   : > { %v1643_v26 = vpop.xlane.xlu1 %1642 }
0x12bc   : > { %v1644_v27 = vmul.f32 %v1643_v26, %v2200_v8 }
0x12be   : > { %v1645_v28 = vsub.f32 %v1638_v24, %v1644_v27 }
0x12c0   : > { %v1646_v29 = vmul.f32 %v1645_v28, %v1645_v28 }
0x12c2   : > { %v1647_v31 = vsel %vm524_vm0, %v1646_v29, 0.0 }
0x12c3   : > { %1648 = vadd.xlane.f32.xlu0 %v1647_v31 }
0x1336   : > { %v1649_v36 = vpop.xlane.xlu0 %1648 }
0x1337   : > { %v1650_v37 = vmul.f32 %v1649_v36, %v2200_v8  ;;  %v1929_v8 = vld [vmem:[%s2644_s14] ss:$0 sm:$0xff] }
0x1339   : > { %v1651_v38 = vadd.f32 1e-05, %v1650_v37 }
0x133b   : > { %1976 = vrsqrt.f32 %v1651_v38  ;;  %vm1658_vm2 = vweird.f32 %v1651_v38 }
0x1341   : > { %v1977_v50 = vpop.eup %1976 }
0x1342   : > { %v1653_v39 = vmul.f32 %v1977_v50, %v1651_v38  ;;  %vm1659_vm1 = vweird.f32 %v1977_v50 }
0x1343   : > { %vm1660_vm3 = vmor %vm1658_vm2, %vm1659_vm1 }
0x1344   : > { %v1654_v35 = vmul.f32 %v1977_v50, %v1653_v39 }
0x1346   : > { %v1655_v40 = vmul.f32 0.5, %v1654_v35 }
0x1348   : > { %v1656_v41 = vsub.f32 1.5, %v1655_v40 }
0x134a   : > { %v1657_v42 = vmul.f32 %v1977_v50, %v1656_v41 }
0x134c   : > { %v1661_v45 = vsel %vm1660_vm3, %v1977_v50, %v1657_v42 }
0x134d   : > { %v1662_v46 = vmul.f32 %v1661_v45, %v1645_v28 }
0x134f   : > { %v1666_v47 = vmul.f32 %v1928_v44, %v1662_v46 }
0x1351   : > { %v1670_v48 = vadd.f32 %v1929_v8, %v1666_v47 }
0x1353   : > { %v1676_v49 = vrot.slane %v1670_v48, 7 }
0x1355   : > { %1858 = vmatmul.msk.f32.vlgmr.msra.gmra.mxu1 %vm524_vm0, %v1676_v49 }
0x13d2   : > { %v1696_v51 = vpop.f32.mrf.mxu1 }
0x13d3   : > { %v1700_v52 = vsel %vm1699_vm4, %v1696_v51, -inf }
0x13d4   : > { %1701 = vmax.xlane.f32.xlu0 %v1700_v52 }
0x1447   : > { %v1702_v53 = vpop.xlane.xlu0 %1701 }
0x1448   : > { %v1703_v54 = vsub.f32 %v1696_v51, %v1702_v53 }
0x144a   : > { %v1704_v56 = vmul.f32 1.442695, %v1703_v54 }
0x144c   : > { %1978 = vpow2.f32 %v1704_v56 }
0x1452   : > { %v1979_v57 = vpop.eup %1978 }
0x1453   : > { %v1706_v58 = vsel %vm1699_vm4, %v1979_v57, 0.0 }
0x1454   : > { %1707 = vadd.xlane.f32.xlu2 %v1706_v58 }
0x14c7   : > { %v1708_v55 = vpop.xlane.xlu2 %1707 }
0x14c8   : > { %1980 = vlog2.f32 %v1708_v55 }
0x14ce   : > { %v1981_v59 = vpop.eup %1980 }
0x14cf   : > { %v1710_v60 = vmul.f32 0.6931472, %v1981_v59 }
0x14d1   : > { %v1711_v61 = vsub.f32 %v1703_v54, %v1710_v60 }
0x14d3   : > { %1712 = vst.msk [vmem:[%s511_s18] sm:$0x1] %vm1699_vm4, %v1711_v61 }
0x14d4   : > { %2009 = shalt.err (!%p2006_p3)
}
0x14d5   : > { %1861 = dma.vmem_to_hbm [thread:$0]  (%p2181_p5), %s1725_s19, 16, %s1727_s20, %s1714_s30  }
0x14d6 PF: > { %p1867_p4 = scmp.ge.s32.totalorder %s2044_s24, 2  ;;  %s1738_s18 = sand.u32 1, %s2032_s21  }
0x14d7   : > { %s1739_s27 = scalar_lea.sflag [#allocation3], %s1738_s18 }
0x14d8   : > { %p1864_p7 = pnand %p1867_p4, %p2185_p6 }
0x14da   : > { %p1865_p8 = pneg %p1864_p7 }
0x14dc   : > { %2027 = dma.done.wait (%p1865_p8), %s1739_s27, 16  }
0x14dd   : > { %2029 = vsyncadd (%p1865_p8), %s1739_s27, 4294967280  ;;  %s2686_s24 = sld [smem:[#allocation6_spill]]  ;;  %s2689_s21 = smov %s2036_s22 }
0x14de   : > { %s2687_s1 = sld [smem:[#allocation5_spill]] }
0x14df   : > { %s2688_s23 = sld [smem:[#allocation7_spill]] }
0x14e3   : > { %p26_p9 = scmp.ge.s32.totalorder %s2686_s24, 4  }
0x14e4   : > { %s2690_s22 = smov %s2687_s1 }
0x14e5   :  { %28 = sbr.rel (!%p26_p9) target bundleno = 6 (0x6), region = 131 }
0x14ea   :  { %1744 = vsyncpa [#allocation3], 1 }
0x14eb   :  { %1746 = vsyncpa [#allocation3 + $0x1], 1 }

</bundles_post_ra>
